<compile_context>
chip_gen: v6e
topology: v6e:2x2x1
jax: 0.10.0
libtpu: 0.0.40
codegen_flags: <defaults>
</compile_context>

<pallas_src>
import functools

import jax
import jax.numpy as jnp
from jax.experimental import pallas as pl
from jax.experimental.pallas import tpu as pltpu

_EPS = 1e-5
_SLOPE = 0.2
_MB = 1024 * 1024


@functools.lru_cache(maxsize=None)
def _vmem_limit_bytes():
    """Generation-aware scoped-VMEM budget (v7x only has 64 MiB / TensorCore)."""
    try:
        info = pltpu.get_tpu_info()
        cap = int(getattr(info, "vmem_capacity_bytes", 64 * _MB))
    except Exception:
        cap = 64 * _MB
    return 48 * _MB if cap >= 96 * _MB else 36 * _MB


def _pick_tm(M, per_col_bytes, budget, cap=1024):
    """Largest lane tile (multiple of 128, divides M) fitting `budget`,
    preferring >= 2 grid steps so work can be split across steps / cores."""
    cands = [t for t in range(128, min(M, cap) + 1, 128)
             if M % t == 0 and t * per_col_bytes <= budget]
    if not cands:
        return None
    multi = [t for t in cands if M // t >= 2]
    return max(multi) if multi else max(cands)


def _lrelu(x):
    return jnp.where(x > 0, x, _SLOPE * x)


# ---------------------------------------------------------------------------
# Pallas kernels
# ---------------------------------------------------------------------------
def _conv_lrelu_kernel(w_ref, p_ref, o_ref):
    """(Cout, K) @ (K, tm) matmul tile with fused LeakyReLU(0.2), bf16 out."""
    y = jnp.dot(w_ref[...], p_ref[...], preferred_element_type=jnp.float32)
    o_ref[...] = _lrelu(y).astype(o_ref.dtype)


def _conv_bn_lrelu_kernel(w_ref, g_ref, b_ref, p_ref, o_ref,
                          y_buf, s_buf, sq_buf, *, inv_m):
    """Fused Conv + BatchNorm(batch stats) + LeakyReLU over a two-phase grid.

    Grid = (phase, M tile); phase 0 computes the conv tile and BN partial
    stats (kept in VMEM scratch), phase 1 normalizes and writes bf16 output.
    """
    ph = pl.program_id(0)
    i = pl.program_id(1)

    @pl.when((ph == 0) & (i == 0))
    def _init():
        s_buf[...] = jnp.zeros_like(s_buf)
        sq_buf[...] = jnp.zeros_like(sq_buf)

    @pl.when(ph == 0)
    def _conv_phase():
        y = jnp.dot(w_ref[...], p_ref[...], preferred_element_type=jnp.float32)
        y_buf[i] = y
        s_buf[...] = s_buf[...] + jnp.sum(y, axis=1, keepdims=True)
        sq_buf[...] = sq_buf[...] + jnp.sum(y * y, axis=1, keepdims=True)

    @pl.when(ph == 1)
    def _norm_phase():
        mean = s_buf[...] * inv_m
        var = sq_buf[...] * inv_m - mean * mean
        scale = g_ref[...] * jax.lax.rsqrt(var + _EPS)
        shift = b_ref[...] - mean * scale
        z = y_buf[i] * scale + shift
        o_ref[...] = _lrelu(z).astype(o_ref.dtype)


# ---------------------------------------------------------------------------
# Pallas wrappers (with plain-JAX fallback for tiny / irregular M)
# ---------------------------------------------------------------------------
def conv_lrelu(patches, w_mat):
    """patches (K, M) bf16, w_mat (C, K) bf16 -> (C, M) bf16."""
    C, K = w_mat.shape
    _, M = patches.shape
    budget = _vmem_limit_bytes() - 2 * C * K * 2
    tm = _pick_tm(M, per_col_bytes=4 * K + 4 * C, budget=budget) if budget > 0 else None
    if tm is None:
        y = jnp.einsum("ck,km->cm", w_mat, patches,
                       preferred_element_type=jnp.float32)
        return _lrelu(y).astype(jnp.bfloat16)
    nt = M // tm
    return pl.pallas_call(
        _conv_lrelu_kernel,
        out_shape=jax.ShapeDtypeStruct((C, M), jnp.bfloat16),
        grid=(nt,),
        in_specs=[
            pl.BlockSpec((C, K), lambda i: (0, 0)),
            pl.BlockSpec((K, tm), lambda i: (0, i)),
        ],
        out_specs=pl.BlockSpec((C, tm), lambda i: (0, i)),
        compiler_params=pltpu.CompilerParams(
            dimension_semantics=("parallel",),
            vmem_limit_bytes=_vmem_limit_bytes()),
    )(w_mat, patches)


def conv_bn_lrelu(patches, w_mat, gamma, beta):
    """Fused Conv + training-mode BatchNorm + LeakyReLU.

    patches (K, M) bf16, w_mat (C, K) bf16, gamma/beta (C,) f32 -> (C, M) bf16.
    """
    C, K = w_mat.shape
    _, M = patches.shape
    g = gamma.reshape(C, 1).astype(jnp.float32)
    b = beta.reshape(C, 1).astype(jnp.float32)

    # Budget: resident f32 conv-output scratch (C*M*4) + weight/gamma/beta,
    # then per-column cost of double-buffered bf16 patch and output blocks.
    budget = _vmem_limit_bytes() - C * M * 4 - 2 * C * K * 2 - 4 * C * 4
    tm = _pick_tm(M, per_col_bytes=4 * K + 4 * C, budget=budget) if budget > 0 else None
    if tm is None:
        # Tiny-M fallback (e.g. layer 4 at small batch): a pallas_call here is
        # pure launch + masked-store overhead.
        y = jnp.einsum("ck,km->cm", w_mat, patches,
                       preferred_element_type=jnp.float32)
        mean = y.mean(axis=1, keepdims=True)
        var = ((y - mean) ** 2).mean(axis=1, keepdims=True)
        z = (y - mean) * jax.lax.rsqrt(var + _EPS) * g + b
        return _lrelu(z).astype(jnp.bfloat16)

    nt = M // tm
    kernel = functools.partial(_conv_bn_lrelu_kernel, inv_m=1.0 / float(M))
    return pl.pallas_call(
        kernel,
        out_shape=jax.ShapeDtypeStruct((C, M), jnp.bfloat16),
        grid=(2, nt),  # phase axis MUST be outer: stats are global over M
        in_specs=[
            pl.BlockSpec((C, K), lambda ph, i: (0, 0)),
            pl.BlockSpec((C, 1), lambda ph, i: (0, 0)),
            pl.BlockSpec((C, 1), lambda ph, i: (0, 0)),
            # Phase 1 does not need patches: park on the last block (no re-fetch).
            pl.BlockSpec((K, tm), lambda ph, i: (0, i * (1 - ph) + (nt - 1) * ph)),
        ],
        # Phase 0 never changes the output block index -> no garbage write-back.
        out_specs=pl.BlockSpec((C, tm), lambda ph, i: (0, ph * i)),
        scratch_shapes=[
            pltpu.VMEM((nt, C, tm), jnp.float32),   # conv output parked per tile
            pltpu.VMEM((C, 1), jnp.float32),        # per-channel sum
            pltpu.VMEM((C, 1), jnp.float32),        # per-channel sum of squares
        ],
        compiler_params=pltpu.CompilerParams(
            # Both axes sequential: phase-1 normalization needs stats from all
            # tiles.  TODO(synk): shard over Cout for v7x megacore instead.
            dimension_semantics=("arbitrary", "arbitrary"),
            vmem_limit_bytes=_vmem_limit_bytes()),
    )(w_mat, g, b, patches)


# ---------------------------------------------------------------------------
# Plain-JAX glue (channel-major layout throughout; no full-tensor transposes)
# ---------------------------------------------------------------------------
def im2col_cm(h, k, stride, pad):
    """h: (C, N, H, W) -> bf16 patches (C*k*k, N*Ho*Wo), row order (cin, kh, kw)."""
    C, N, H, W = h.shape
    hp = jnp.pad(h, ((0, 0), (0, 0), (pad, pad), (pad, pad)))
    Ho = (H + 2 * pad - k) // stride + 1
    Wo = (W + 2 * pad - k) // stride + 1
    cols = [hp[:, :, kh:kh + stride * Ho:stride, kw:kw + stride * Wo:stride]
            for kh in range(k) for kw in range(k)]
    p = jnp.stack(cols, axis=1)                    # (C, k*k, N, Ho, Wo)
    p = p.reshape(C * k * k, N * Ho * Wo)          # (K, M)
    return p.astype(jnp.bfloat16), Ho, Wo


def _w_mat(w):
    """PyTorch OIHW (Cout, Cin, kh, kw) -> (Cout, Cin*kh*kw) bf16 matmul LHS."""
    return w.reshape(w.shape[0], -1).astype(jnp.bfloat16)


def discriminator_forward(x, params, ndf):
    """x: (N, 3, 64, 64) f32 -> (N, 1) f32."""
    N = x.shape[0]
    h = x.astype(jnp.bfloat16).transpose(1, 0, 2, 3)   # one-time -> (3, N, 64, 64)

    # layer 1: Conv(3 -> ndf, 4, 2, 1) + LeakyReLU
    p, Ho, Wo = im2col_cm(h, 4, 2, 1)
    h = conv_lrelu(p, _w_mat(params["w1"])).reshape(ndf, N, Ho, Wo)

    # layers 2-4: fused Conv + BatchNorm(batch stats) + LeakyReLU
    for li, mult in ((2, 2), (3, 4), (4, 8)):
        c_out = mult * ndf
        p, Ho, Wo = im2col_cm(h, 4, 2, 1)
        h = conv_bn_lrelu(p, _w_mat(params[f"w{li}"]),
                          params[f"g{li}"], params[f"b{li}"])
        h = h.reshape(c_out, N, Ho, Wo)

    # layer 5: Conv(8ndf -> 1, 4, 1, 0) + Sigmoid  ==  (N, 8ndf*16) x (.., 1)
    # matmul; one output lane, so a Pallas call would be pure overhead.
    logits = jnp.einsum("cnhw,ochw->no",
                        h, params["w5"].astype(jnp.bfloat16),
                        preferred_element_type=jnp.float32)
    return jax.nn.sigmoid(logits).reshape(-1, 1)


# ---------------------------------------------------------------------------
# Pure-JAX reference (same bf16-operand / f32-accumulate conv arithmetic)
# ---------------------------------------------------------------------------
def reference_forward(x, params):
    def conv(h, w, stride, pad):
        return jax.lax.conv_general_dilated(
            h.astype(jnp.bfloat16), w.astype(jnp.bfloat16),
            (stride, stride), [(pad, pad), (pad, pad)],
            dimension_numbers=("NCHW", "OIHW", "NCHW"),
            preferred_element_type=jnp.float32)

    def bn(h, g, b):
        mean = h.mean(axis=(0, 2, 3), keepdims=True)
        var = ((h - mean) ** 2).mean(axis=(0, 2, 3), keepdims=True)
        return ((h - mean) * jax.lax.rsqrt(var + _EPS)
                * g[None, :, None, None] + b[None, :, None, None])

    def lrelu(h):
        return jnp.where(h > 0, h, _SLOPE * h)

    h = lrelu(conv(x, params["w1"], 2, 1))
    h = lrelu(bn(conv(h, params["w2"], 2, 1), params["g2"], params["b2"]))
    h = lrelu(bn(conv(h, params["w3"], 2, 1), params["g3"], params["b3"]))
    h = lrelu(bn(conv(h, params["w4"], 2, 1), params["g4"], params["b4"]))
    h = jax.nn.sigmoid(conv(h, params["w5"], 1, 0))
    return h.reshape(-1, 1)


# ---------------------------------------------------------------------------
# Main
# ---------------------------------------------------------------------------
if __name__ == "__main__":
    ndf = 8      # small feature width
    N = 2        # batch; input must be 64x64 so the final 4x4/s1/p0 conv fits
    key = jax.random.PRNGKey(0)
    k_x, k1, k2, k3, k4, k5 = jax.random.split(key, 6)

    x = jax.random.normal(k_x, (N, 3, 64, 64), dtype=jnp.float32)

    def init(k, shape):   # DCGAN-style N(0, 0.02) init; BN gamma=1, beta=0
        return 0.02 * jax.random.normal(k, shape, dtype=jnp.float32)

    params = {
        "w1": init(k1, (ndf, 3, 4, 4)),
        "w2": init(k2, (2 * ndf, ndf, 4, 4)),
        "w3": init(k3, (4 * ndf, 2 * ndf, 4, 4)),
        "w4": init(k4, (8 * ndf, 4 * ndf, 4, 4)),
        "w5": init(k5, (1, 8 * ndf, 4, 4)),
        "g2": jnp.ones((2 * ndf,), jnp.float32),
        "b2": jnp.zeros((2 * ndf,), jnp.float32),
        "g3": jnp.ones((4 * ndf,), jnp.float32),
        "b3": jnp.zeros((4 * ndf,), jnp.float32),
        "g4": jnp.ones((8 * ndf,), jnp.float32),
        "b4": jnp.zeros((8 * ndf,), jnp.float32),
    }

    out = jax.jit(functools.partial(discriminator_forward, ndf=ndf))(x, params)
    out = jax.block_until_ready(out)
    assert out.shape == (N, 1), out.shape

    ref = jax.block_until_ready(jax.jit(reference_forward)(x, params))
    assert jnp.allclose(out, ref, atol=3e-3, rtol=3e-3), (out, ref)

    print("KERNEL_OK")
</pallas_src>

<mosaic_0001>
module attributes {stable_mosaic.version = 11 : i64} {
  func.func @_conv_lrelu_kernel(%arg0: i32, %arg1: memref<8x48xbf16, #tpu.memory_space<vmem>>, %arg2: memref<48x1024xbf16, #tpu.memory_space<vmem>>, %arg3: memref<8x1024xbf16, #tpu.memory_space<vmem>>) attributes {dimension_semantics = [#tpu.dimension_semantics<parallel>], iteration_bounds = array<i64: 2>, scalar_prefetch = 0 : i64, scratch_operands = 0 : i64, tpu.core_type = #tpu.core_type<tc>, window_params = [{pipeline_mode = #tpu.pipeline_mode<synchronous>, transform_indices = @transform_0, window_bounds = array<i64: 8, 48>}, {transform_indices = @transform_1, window_bounds = array<i64: 48, 1024>}, {transform_indices = @transform_2, window_bounds = array<i64: 8, 1024>}]} {
    %c0 = arith.constant 0 : index
    %c0_0 = arith.constant 0 : index
    %0 = vector.load %arg1[%c0, %c0_0] : memref<8x48xbf16, #tpu.memory_space<vmem>>, vector<8x48xbf16>
    %c0_1 = arith.constant 0 : index
    %c0_2 = arith.constant 0 : index
    %1 = vector.load %arg2[%c0_1, %c0_2] : memref<48x1024xbf16, #tpu.memory_space<vmem>>, vector<48x1024xbf16>
    %cst = arith.constant dense<0.000000e+00> : vector<8x1024xf32>
    %2 = tpu.matmul %0, %1, %cst {dimension_numbers = #tpu.dot_dimension_numbers<[1], [0], [0], [1], [0, 0, 1, 1], [], []>} : vector<8x48xbf16>, vector<48x1024xbf16>, vector<8x1024xf32> -> vector<8x1024xf32>
    %cst_3 = arith.constant 0.000000e+00 : f32
    %3 = vector.broadcast %cst_3 : f32 to vector<8x1024xf32>
    %4 = arith.cmpf ogt, %2, %3 : vector<8x1024xf32>
    %cst_4 = arith.constant 2.000000e-01 : f32
    %5 = vector.broadcast %cst_4 : f32 to vector<8x1024xf32>
    %6 = arith.mulf %5, %2 : vector<8x1024xf32>
    %7 = arith.select %4, %2, %6 : vector<8x1024xi1>, vector<8x1024xf32>
    %8 = arith.truncf %7 : vector<8x1024xf32> to vector<8x1024xbf16>
    %c0_5 = arith.constant 0 : index
    %c0_6 = arith.constant 0 : index
    %9 = vector.load %arg3[%c0_5, %c0_6] : memref<8x1024xbf16, #tpu.memory_space<vmem>>, vector<8x1024xbf16>
    tpu.vector_store %arg3[%c0_5, %c0_6], %8 {strides = array<i32>} : memref<8x1024xbf16, #tpu.memory_space<vmem>>, vector<8x1024xbf16>,
    return
  }
  func.func @transform_0(%arg0: i32) -> (i32, i32) {
    %c0_i32 = arith.constant 0 : i32
    %c0_i32_0 = arith.constant 0 : i32
    %c0_i32_1 = arith.constant 0 : i32
    return %c0_i32, %c0_i32_0 : i32, i32
  }
  func.func @transform_1(%arg0: i32) -> (i32, i32) {
    %c0_i32 = arith.constant 0 : i32
    %c0_i32_0 = arith.constant 0 : i32
    return %c0_i32, %arg0 : i32, i32
  }
  func.func @transform_2(%arg0: i32) -> (i32, i32) {
    %c0_i32 = arith.constant 0 : i32
    %c0_i32_0 = arith.constant 0 : i32
    return %c0_i32, %arg0 : i32, i32
  }
}

module attributes {stable_mosaic.version = 11 : i64} {
  func.func @_conv_bn_lrelu_kernel(%arg0: i32, %arg1: i32, %arg2: memref<16x128xbf16, #tpu.memory_space<vmem>>, %arg3: memref<16x1xf32, #tpu.memory_space<vmem>>, %arg4: memref<16x1xf32, #tpu.memory_space<vmem>>, %arg5: memref<128x256xbf16, #tpu.memory_space<vmem>>, %arg6: memref<16x256xbf16, #tpu.memory_space<vmem>>, %arg7: memref<2x16x256xf32, #tpu.memory_space<vmem>>, %arg8: memref<16x1xf32, #tpu.memory_space<vmem>>, %arg9: memref<16x1xf32, #tpu.memory_space<vmem>>) attributes {dimension_semantics = [#tpu.dimension_semantics<arbitrary>, #tpu.dimension_semantics<arbitrary>], iteration_bounds = array<i64: 2, 2>, scalar_prefetch = 0 : i64, scratch_operands = 3 : i64, tpu.core_type = #tpu.core_type<tc>, window_params = [{pipeline_mode = #tpu.pipeline_mode<synchronous>, transform_indices = @transform_0, window_bounds = array<i64: 16, 128>}, {pipeline_mode = #tpu.pipeline_mode<synchronous>, transform_indices = @transform_1, window_bounds = array<i64: 16, 1>}, {pipeline_mode = #tpu.pipeline_mode<synchronous>, transform_indices = @transform_2, window_bounds = array<i64: 16, 1>}, {transform_indices = @transform_3, window_bounds = array<i64: 128, 256>}, {transform_indices = @transform_4, window_bounds = array<i64: 16, 256>}]} {
    %c0_i32 = arith.constant 0 : i32
    %0 = arith.cmpi eq, %arg0, %c0_i32 : i32
    %c0_i32_0 = arith.constant 0 : i32
    %1 = arith.cmpi eq, %arg1, %c0_i32_0 : i32
    %2 = arith.andi %0, %1 : i1
    %3 = arith.extui %2 : i1 to i32
    %c0_i32_1 = arith.constant 0 : i32
    %4 = arith.cmpi ne, %3, %c0_i32_1 : i32
    scf.if %4 {
      %cst = arith.constant 0.000000e+00 : f32
      %11 = vector.broadcast %cst : f32 to vector<16x1xf32>
      %c0 = arith.constant 0 : index
      %c0_5 = arith.constant 0 : index
      %12 = vector.load %arg8[%c0, %c0_5] : memref<16x1xf32, #tpu.memory_space<vmem>>, vector<16x1xf32>
      tpu.vector_store %arg8[%c0, %c0_5], %11 {strides = array<i32>} : memref<16x1xf32, #tpu.memory_space<vmem>>, vector<16x1xf32>,
      %cst_6 = arith.constant 0.000000e+00 : f32
      %13 = vector.broadcast %cst_6 : f32 to vector<16x1xf32>
      %c0_7 = arith.constant 0 : index
      %c0_8 = arith.constant 0 : index
      %14 = vector.load %arg9[%c0_7, %c0_8] : memref<16x1xf32, #tpu.memory_space<vmem>>, vector<16x1xf32>
      tpu.vector_store %arg9[%c0_7, %c0_8], %13 {strides = array<i32>} : memref<16x1xf32, #tpu.memory_space<vmem>>, vector<16x1xf32>,
    } else {
    }
    %c0_i32_2 = arith.constant 0 : i32
    %5 = arith.cmpi eq, %arg0, %c0_i32_2 : i32
    %6 = arith.extui %5 : i1 to i32
    %c0_i32_3 = arith.constant 0 : i32
    %7 = arith.cmpi ne, %6, %c0_i32_3 : i32
    scf.if %7 {
      %c0 = arith.constant 0 : index
      %c0_5 = arith.constant 0 : index
      %11 = vector.load %arg2[%c0, %c0_5] : memref<16x128xbf16, #tpu.memory_space<vmem>>, vector<16x128xbf16>
      %c0_6 = arith.constant 0 : index
      %c0_7 = arith.constant 0 : index
      %12 = vector.load %arg5[%c0_6, %c0_7] : memref<128x256xbf16, #tpu.memory_space<vmem>>, vector<128x256xbf16>
      %cst = arith.constant dense<0.000000e+00> : vector<16x256xf32>
      %13 = tpu.matmul %11, %12, %cst {dimension_numbers = #tpu.dot_dimension_numbers<[1], [0], [0], [1], [0, 0, 1, 1], [], []>} : vector<16x128xbf16>, vector<128x256xbf16>, vector<16x256xf32> -> vector<16x256xf32>
      %14 = arith.index_cast %arg1 : i32 to index
      %c0_8 = arith.constant 0 : index
      %c0_9 = arith.constant 0 : index
      %15 = vector.load %arg7[%14, %c0_8, %c0_9] : memref<2x16x256xf32, #tpu.memory_space<vmem>>, vector<1x16x256xf32>
      %16 = vector.shape_cast %15 : vector<1x16x256xf32> to vector<16x256xf32>
      %17 = vector.shape_cast %13 : vector<16x256xf32> to vector<1x16x256xf32>
      tpu.vector_store %arg7[%14, %c0_8, %c0_9], %17 {strides = array<i32>} : memref<2x16x256xf32, #tpu.memory_space<vmem>>, vector<1x16x256xf32>,
      %c0_10 = arith.constant 0 : index
      %c0_11 = arith.constant 0 : index
      %18 = vector.load %arg8[%c0_10, %c0_11] : memref<16x1xf32, #tpu.memory_space<vmem>>, vector<16x1xf32>
      %cst_12 = arith.constant dense<0.000000e+00> : vector<16xf32>
      %19 = vector.multi_reduction <add>, %13, %cst_12 [1] : vector<16x256xf32> to vector<16xf32>
      %20 = vector.shape_cast %19 : vector<16xf32> to vector<16x1xf32>
      %21 = arith.addf %18, %20 : vector<16x1xf32>
      %c0_13 = arith.constant 0 : index
      %c0_14 = arith.constant 0 : index
      %22 = vector.load %arg8[%c0_13, %c0_14] : memref<16x1xf32, #tpu.memory_space<vmem>>, vector<16x1xf32>
      tpu.vector_store %arg8[%c0_13, %c0_14], %21 {strides = array<i32>} : memref<16x1xf32, #tpu.memory_space<vmem>>, vector<16x1xf32>,
      %c0_15 = arith.constant 0 : index
      %c0_16 = arith.constant 0 : index
      %23 = vector.load %arg9[%c0_15, %c0_16] : memref<16x1xf32, #tpu.memory_space<vmem>>, vector<16x1xf32>
      %24 = arith.mulf %13, %13 : vector<16x256xf32>
      %cst_17 = arith.constant dense<0.000000e+00> : vector<16xf32>
      %25 = vector.multi_reduction <add>, %24, %cst_17 [1] : vector<16x256xf32> to vector<16xf32>
      %26 = vector.shape_cast %25 : vector<16xf32> to vector<16x1xf32>
      %27 = arith.addf %23, %26 : vector<16x1xf32>
      %c0_18 = arith.constant 0 : index
      %c0_19 = arith.constant 0 : index
      %28 = vector.load %arg9[%c0_18, %c0_19] : memref<16x1xf32, #tpu.memory_space<vmem>>, vector<16x1xf32>
      tpu.vector_store %arg9[%c0_18, %c0_19], %27 {strides = array<i32>} : memref<16x1xf32, #tpu.memory_space<vmem>>, vector<16x1xf32>,
    } else {
    }
    %c1_i32 = arith.constant 1 : i32
    %8 = arith.cmpi eq, %arg0, %c1_i32 : i32
    %9 = arith.extui %8 : i1 to i32
    %c0_i32_4 = arith.constant 0 : i32
    %10 = arith.cmpi ne, %9, %c0_i32_4 : i32
    scf.if %10 {
      %c0 = arith.constant 0 : index
      %c0_5 = arith.constant 0 : index
      %11 = vector.load %arg8[%c0, %c0_5] : memref<16x1xf32, #tpu.memory_space<vmem>>, vector<16x1xf32>
      %cst = arith.constant 0.001953125 : f32
      %12 = vector.broadcast %cst : f32 to vector<16x1xf32>
      %13 = arith.mulf %11, %12 : vector<16x1xf32>
      %c0_6 = arith.constant 0 : index
      %c0_7 = arith.constant 0 : index
      %14 = vector.load %arg9[%c0_6, %c0_7] : memref<16x1xf32, #tpu.memory_space<vmem>>, vector<16x1xf32>
      %cst_8 = arith.constant 0.001953125 : f32
      %15 = vector.broadcast %cst_8 : f32 to vector<16x1xf32>
      %16 = arith.mulf %14, %15 : vector<16x1xf32>
      %17 = arith.mulf %13, %13 : vector<16x1xf32>
      %18 = arith.subf %16, %17 : vector<16x1xf32>
      %c0_9 = arith.constant 0 : index
      %c0_10 = arith.constant 0 : index
      %19 = vector.load %arg3[%c0_9, %c0_10] : memref<16x1xf32, #tpu.memory_space<vmem>>, vector<16x1xf32>
      %cst_11 = arith.constant 9.99999974E-6 : f32
      %20 = vector.broadcast %cst_11 : f32 to vector<16x1xf32>
      %21 = arith.addf %18, %20 : vector<16x1xf32>
      %22 = math.rsqrt %21 : vector<16x1xf32>
      %23 = arith.mulf %19, %22 : vector<16x1xf32>
      %c0_12 = arith.constant 0 : index
      %c0_13 = arith.constant 0 : index
      %24 = vector.load %arg4[%c0_12, %c0_13] : memref<16x1xf32, #tpu.memory_space<vmem>>, vector<16x1xf32>
      %25 = arith.mulf %13, %23 : vector<16x1xf32>
      %26 = arith.subf %24, %25 : vector<16x1xf32>
      %27 = arith.index_cast %arg1 : i32 to index
      %c0_14 = arith.constant 0 : index
      %c0_15 = arith.constant 0 : index
      %28 = vector.load %arg7[%27, %c0_14, %c0_15] : memref<2x16x256xf32, #tpu.memory_space<vmem>>, vector<1x16x256xf32>
      %29 = vector.shape_cast %28 : vector<1x16x256xf32> to vector<16x256xf32>
      %30 = vector.broadcast %23 : vector<16x1xf32> to vector<16x256xf32>
      %31 = arith.mulf %29, %30 : vector<16x256xf32>
      %32 = vector.broadcast %26 : vector<16x1xf32> to vector<16x256xf32>
      %33 = arith.addf %31, %32 : vector<16x256xf32>
      %cst_16 = arith.constant 0.000000e+00 : f32
      %34 = vector.broadcast %cst_16 : f32 to vector<16x256xf32>
      %35 = arith.cmpf ogt, %33, %34 : vector<16x256xf32>
      %cst_17 = arith.constant 2.000000e-01 : f32
      %36 = vector.broadcast %cst_17 : f32 to vector<16x256xf32>
      %37 = arith.mulf %36, %33 : vector<16x256xf32>
      %38 = arith.select %35, %33, %37 : vector<16x256xi1>, vector<16x256xf32>
      %39 = arith.truncf %38 : vector<16x256xf32> to vector<16x256xbf16>
      %c0_18 = arith.constant 0 : index
      %c0_19 = arith.constant 0 : index
      %40 = vector.load %arg6[%c0_18, %c0_19] : memref<16x256xbf16, #tpu.memory_space<vmem>>, vector<16x256xbf16>
      tpu.vector_store %arg6[%c0_18, %c0_19], %39 {strides = array<i32>} : memref<16x256xbf16, #tpu.memory_space<vmem>>, vector<16x256xbf16>,
    } else {
    }
    return
  }
  func.func @transform_0(%arg0: i32, %arg1: i32) -> (i32, i32) {
    %c0_i32 = arith.constant 0 : i32
    %c0_i32_0 = arith.constant 0 : i32
    %c0_i32_1 = arith.constant 0 : i32
    return %c0_i32, %c0_i32_0 : i32, i32
  }
  func.func @transform_1(%arg0: i32, %arg1: i32) -> (i32, i32) {
    %c0_i32 = arith.constant 0 : i32
    %c0_i32_0 = arith.constant 0 : i32
    %c0_i32_1 = arith.constant 0 : i32
    return %c0_i32, %c0_i32_0 : i32, i32
  }
  func.func @transform_2(%arg0: i32, %arg1: i32) -> (i32, i32) {
    %c0_i32 = arith.constant 0 : i32
    %c0_i32_0 = arith.constant 0 : i32
    %c0_i32_1 = arith.constant 0 : i32
    return %c0_i32, %c0_i32_0 : i32, i32
  }
  func.func @transform_3(%arg0: i32, %arg1: i32) -> (i32, i32) {
    %c1_i32 = arith.constant 1 : i32
    %0 = arith.subi %c1_i32, %arg0 : i32
    %1 = arith.muli %arg1, %0 : i32
    %c1_i32_0 = arith.constant 1 : i32
    %2 = arith.muli %c1_i32_0, %arg0 : i32
    %3 = arith.addi %1, %2 : i32
    %c0_i32 = arith.constant 0 : i32
    %c0_i32_1 = arith.constant 0 : i32
    return %c0_i32, %3 : i32, i32
  }
  func.func @transform_4(%arg0: i32, %arg1: i32) -> (i32, i32) {
    %0 = arith.muli %arg0, %arg1 : i32
    %c0_i32 = arith.constant 0 : i32
    %c0_i32_0 = arith.constant 0 : i32
    return %c0_i32, %0 : i32, i32
  }
}

module attributes {stable_mosaic.version = 11 : i64} {
  func.func @_conv_bn_lrelu_kernel(%arg0: i32, %arg1: i32, %arg2: memref<32x256xbf16, #tpu.memory_space<vmem>>, %arg3: memref<32x1xf32, #tpu.memory_space<vmem>>, %arg4: memref<32x1xf32, #tpu.memory_space<vmem>>, %arg5: memref<256x128xbf16, #tpu.memory_space<vmem>>, %arg6: memref<32x128xbf16, #tpu.memory_space<vmem>>, %arg7: memref<1x32x128xf32, #tpu.memory_space<vmem>>, %arg8: memref<32x1xf32, #tpu.memory_space<vmem>>, %arg9: memref<32x1xf32, #tpu.memory_space<vmem>>) attributes {dimension_semantics = [#tpu.dimension_semantics<arbitrary>, #tpu.dimension_semantics<arbitrary>], iteration_bounds = array<i64: 2, 1>, scalar_prefetch = 0 : i64, scratch_operands = 3 : i64, tpu.core_type = #tpu.core_type<tc>, window_params = [{pipeline_mode = #tpu.pipeline_mode<synchronous>, transform_indices = @transform_0, window_bounds = array<i64: 32, 256>}, {pipeline_mode = #tpu.pipeline_mode<synchronous>, transform_indices = @transform_1, window_bounds = array<i64: 32, 1>}, {pipeline_mode = #tpu.pipeline_mode<synchronous>, transform_indices = @transform_2, window_bounds = array<i64: 32, 1>}, {transform_indices = @transform_3, window_bounds = array<i64: 256, 128>}, {transform_indices = @transform_4, window_bounds = array<i64: 32, 128>}]} {
    %c0_i32 = arith.constant 0 : i32
    %0 = arith.cmpi eq, %arg0, %c0_i32 : i32
    %c0_i32_0 = arith.constant 0 : i32
    %1 = arith.cmpi eq, %arg1, %c0_i32_0 : i32
    %2 = arith.andi %0, %1 : i1
    %3 = arith.extui %2 : i1 to i32
    %c0_i32_1 = arith.constant 0 : i32
    %4 = arith.cmpi ne, %3, %c0_i32_1 : i32
    scf.if %4 {
      %cst = arith.constant 0.000000e+00 : f32
      %11 = vector.broadcast %cst : f32 to vector<32x1xf32>
      %c0 = arith.constant 0 : index
      %c0_5 = arith.constant 0 : index
      %12 = vector.load %arg8[%c0, %c0_5] : memref<32x1xf32, #tpu.memory_space<vmem>>, vector<32x1xf32>
      tpu.vector_store %arg8[%c0, %c0_5], %11 {strides = array<i32>} : memref<32x1xf32, #tpu.memory_space<vmem>>, vector<32x1xf32>,
      %cst_6 = arith.constant 0.000000e+00 : f32
      %13 = vector.broadcast %cst_6 : f32 to vector<32x1xf32>
      %c0_7 = arith.constant 0 : index
      %c0_8 = arith.constant 0 : index
      %14 = vector.load %arg9[%c0_7, %c0_8] : memref<32x1xf32, #tpu.memory_space<vmem>>, vector<32x1xf32>
      tpu.vector_store %arg9[%c0_7, %c0_8], %13 {strides = array<i32>} : memref<32x1xf32, #tpu.memory_space<vmem>>, vector<32x1xf32>,
    } else {
    }
    %c0_i32_2 = arith.constant 0 : i32
    %5 = arith.cmpi eq, %arg0, %c0_i32_2 : i32
    %6 = arith.extui %5 : i1 to i32
    %c0_i32_3 = arith.constant 0 : i32
    %7 = arith.cmpi ne, %6, %c0_i32_3 : i32
    scf.if %7 {
      %c0 = arith.constant 0 : index
      %c0_5 = arith.constant 0 : index
      %11 = vector.load %arg2[%c0, %c0_5] : memref<32x256xbf16, #tpu.memory_space<vmem>>, vector<32x256xbf16>
      %c0_6 = arith.constant 0 : index
      %c0_7 = arith.constant 0 : index
      %12 = vector.load %arg5[%c0_6, %c0_7] : memref<256x128xbf16, #tpu.memory_space<vmem>>, vector<256x128xbf16>
      %cst = arith.constant dense<0.000000e+00> : vector<32x128xf32>
      %13 = tpu.matmul %11, %12, %cst {dimension_numbers = #tpu.dot_dimension_numbers<[1], [0], [0], [1], [0, 0, 1, 1], [], []>} : vector<32x256xbf16>, vector<256x128xbf16>, vector<32x128xf32> -> vector<32x128xf32>
      %14 = arith.index_cast %arg1 : i32 to index
      %c0_8 = arith.constant 0 : index
      %c0_9 = arith.constant 0 : index
      %15 = vector.load %arg7[%14, %c0_8, %c0_9] : memref<1x32x128xf32, #tpu.memory_space<vmem>>, vector<1x32x128xf32>
      %16 = vector.shape_cast %15 : vector<1x32x128xf32> to vector<32x128xf32>
      %17 = vector.shape_cast %13 : vector<32x128xf32> to vector<1x32x128xf32>
      tpu.vector_store %arg7[%14, %c0_8, %c0_9], %17 {strides = array<i32>} : memref<1x32x128xf32, #tpu.memory_space<vmem>>, vector<1x32x128xf32>,
      %c0_10 = arith.constant 0 : index
      %c0_11 = arith.constant 0 : index
      %18 = vector.load %arg8[%c0_10, %c0_11] : memref<32x1xf32, #tpu.memory_space<vmem>>, vector<32x1xf32>
      %cst_12 = arith.constant dense<0.000000e+00> : vector<32xf32>
      %19 = vector.multi_reduction <add>, %13, %cst_12 [1] : vector<32x128xf32> to vector<32xf32>
      %20 = vector.shape_cast %19 : vector<32xf32> to vector<32x1xf32>
      %21 = arith.addf %18, %20 : vector<32x1xf32>
      %c0_13 = arith.constant 0 : index
      %c0_14 = arith.constant 0 : index
      %22 = vector.load %arg8[%c0_13, %c0_14] : memref<32x1xf32, #tpu.memory_space<vmem>>, vector<32x1xf32>
      tpu.vector_store %arg8[%c0_13, %c0_14], %21 {strides = array<i32>} : memref<32x1xf32, #tpu.memory_space<vmem>>, vector<32x1xf32>,
      %c0_15 = arith.constant 0 : index
      %c0_16 = arith.constant 0 : index
      %23 = vector.load %arg9[%c0_15, %c0_16] : memref<32x1xf32, #tpu.memory_space<vmem>>, vector<32x1xf32>
      %24 = arith.mulf %13, %13 : vector<32x128xf32>
      %cst_17 = arith.constant dense<0.000000e+00> : vector<32xf32>
      %25 = vector.multi_reduction <add>, %24, %cst_17 [1] : vector<32x128xf32> to vector<32xf32>
      %26 = vector.shape_cast %25 : vector<32xf32> to vector<32x1xf32>
      %27 = arith.addf %23, %26 : vector<32x1xf32>
      %c0_18 = arith.constant 0 : index
      %c0_19 = arith.constant 0 : index
      %28 = vector.load %arg9[%c0_18, %c0_19] : memref<32x1xf32, #tpu.memory_space<vmem>>, vector<32x1xf32>
      tpu.vector_store %arg9[%c0_18, %c0_19], %27 {strides = array<i32>} : memref<32x1xf32, #tpu.memory_space<vmem>>, vector<32x1xf32>,
    } else {
    }
    %c1_i32 = arith.constant 1 : i32
    %8 = arith.cmpi eq, %arg0, %c1_i32 : i32
    %9 = arith.extui %8 : i1 to i32
    %c0_i32_4 = arith.constant 0 : i32
    %10 = arith.cmpi ne, %9, %c0_i32_4 : i32
    scf.if %10 {
      %c0 = arith.constant 0 : index
      %c0_5 = arith.constant 0 : index
      %11 = vector.load %arg8[%c0, %c0_5] : memref<32x1xf32, #tpu.memory_space<vmem>>, vector<32x1xf32>
      %cst = arith.constant 7.812500e-03 : f32
      %12 = vector.broadcast %cst : f32 to vector<32x1xf32>
      %13 = arith.mulf %11, %12 : vector<32x1xf32>
      %c0_6 = arith.constant 0 : index
      %c0_7 = arith.constant 0 : index
      %14 = vector.load %arg9[%c0_6, %c0_7] : memref<32x1xf32, #tpu.memory_space<vmem>>, vector<32x1xf32>
      %cst_8 = arith.constant 7.812500e-03 : f32
      %15 = vector.broadcast %cst_8 : f32 to vector<32x1xf32>
      %16 = arith.mulf %14, %15 : vector<32x1xf32>
      %17 = arith.mulf %13, %13 : vector<32x1xf32>
      %18 = arith.subf %16, %17 : vector<32x1xf32>
      %c0_9 = arith.constant 0 : index
      %c0_10 = arith.constant 0 : index
      %19 = vector.load %arg3[%c0_9, %c0_10] : memref<32x1xf32, #tpu.memory_space<vmem>>, vector<32x1xf32>
      %cst_11 = arith.constant 9.99999974E-6 : f32
      %20 = vector.broadcast %cst_11 : f32 to vector<32x1xf32>
      %21 = arith.addf %18, %20 : vector<32x1xf32>
      %22 = math.rsqrt %21 : vector<32x1xf32>
      %23 = arith.mulf %19, %22 : vector<32x1xf32>
      %c0_12 = arith.constant 0 : index
      %c0_13 = arith.constant 0 : index
      %24 = vector.load %arg4[%c0_12, %c0_13] : memref<32x1xf32, #tpu.memory_space<vmem>>, vector<32x1xf32>
      %25 = arith.mulf %13, %23 : vector<32x1xf32>
      %26 = arith.subf %24, %25 : vector<32x1xf32>
      %27 = arith.index_cast %arg1 : i32 to index
      %c0_14 = arith.constant 0 : index
      %c0_15 = arith.constant 0 : index
      %28 = vector.load %arg7[%27, %c0_14, %c0_15] : memref<1x32x128xf32, #tpu.memory_space<vmem>>, vector<1x32x128xf32>
      %29 = vector.shape_cast %28 : vector<1x32x128xf32> to vector<32x128xf32>
      %30 = vector.broadcast %23 : vector<32x1xf32> to vector<32x128xf32>
      %31 = arith.mulf %29, %30 : vector<32x128xf32>
      %32 = vector.broadcast %26 : vector<32x1xf32> to vector<32x128xf32>
      %33 = arith.addf %31, %32 : vector<32x128xf32>
      %cst_16 = arith.constant 0.000000e+00 : f32
      %34 = vector.broadcast %cst_16 : f32 to vector<32x128xf32>
      %35 = arith.cmpf ogt, %33, %34 : vector<32x128xf32>
      %cst_17 = arith.constant 2.000000e-01 : f32
      %36 = vector.broadcast %cst_17 : f32 to vector<32x128xf32>
      %37 = arith.mulf %36, %33 : vector<32x128xf32>
      %38 = arith.select %35, %33, %37 : vector<32x128xi1>, vector<32x128xf32>
      %39 = arith.truncf %38 : vector<32x128xf32> to vector<32x128xbf16>
      %c0_18 = arith.constant 0 : index
      %c0_19 = arith.constant 0 : index
      %40 = vector.load %arg6[%c0_18, %c0_19] : memref<32x128xbf16, #tpu.memory_space<vmem>>, vector<32x128xbf16>
      tpu.vector_store %arg6[%c0_18, %c0_19], %39 {strides = array<i32>} : memref<32x128xbf16, #tpu.memory_space<vmem>>, vector<32x128xbf16>,
    } else {
    }
    return
  }
  func.func @transform_0(%arg0: i32, %arg1: i32) -> (i32, i32) {
    %c0_i32 = arith.constant 0 : i32
    %c0_i32_0 = arith.constant 0 : i32
    %c0_i32_1 = arith.constant 0 : i32
    return %c0_i32, %c0_i32_0 : i32, i32
  }
  func.func @transform_1(%arg0: i32, %arg1: i32) -> (i32, i32) {
    %c0_i32 = arith.constant 0 : i32
    %c0_i32_0 = arith.constant 0 : i32
    %c0_i32_1 = arith.constant 0 : i32
    return %c0_i32, %c0_i32_0 : i32, i32
  }
  func.func @transform_2(%arg0: i32, %arg1: i32) -> (i32, i32) {
    %c0_i32 = arith.constant 0 : i32
    %c0_i32_0 = arith.constant 0 : i32
    %c0_i32_1 = arith.constant 0 : i32
    return %c0_i32, %c0_i32_0 : i32, i32
  }
  func.func @transform_3(%arg0: i32, %arg1: i32) -> (i32, i32) {
    %c1_i32 = arith.constant 1 : i32
    %0 = arith.subi %c1_i32, %arg0 : i32
    %1 = arith.muli %arg1, %0 : i32
    %c0_i32 = arith.constant 0 : i32
    %2 = arith.muli %c0_i32, %arg0 : i32
    %3 = arith.addi %1, %2 : i32
    %c0_i32_0 = arith.constant 0 : i32
    %c0_i32_1 = arith.constant 0 : i32
    return %c0_i32_0, %3 : i32, i32
  }
  func.func @transform_4(%arg0: i32, %arg1: i32) -> (i32, i32) {
    %0 = arith.muli %arg0, %arg1 : i32
    %c0_i32 = arith.constant 0 : i32
    %c0_i32_0 = arith.constant 0 : i32
    return %c0_i32, %0 : i32, i32
  }
}

</mosaic_0001>

<bundles_post_ra>
// kernel: discriminator_forward.3
= control target key start
LH: loop header
LB: loop body
LE: loop exit
PB: predicated region body
PF: predicated region fallthrough
CT: control target
= control target key end

     0   :  { %s763_s9 = smov 0   ;;  %s765_s10 = smov 0   ;;  %s910_s0 = inlined_call_operand.vmem [shape: bf16[8,48], index: 0, kind: input, shape index: {}]   ;;  %s911_s1 = inlined_call_operand.vmem [shape: bf16[48,2048], index: 1, kind: input, shape index: {}]   ;;  %s912_s2 = inlined_call_operand.vmem [shape: bf16[8,2048], index: 2, kind: output, shape index: {}]  }
   0x1   :  { %s767_s11 = smov 0  }
   0x2 LB: > { %s648_s12 = sadd.s32 4294967295, %s745_s11   ;;  %s780_s13 = sadd.s32 1, %s745_s11   ;;  %s745_s11 = sphi %s767_s11, %s915_s11   ;;  %s741_s10 = sphi %s765_s10, %s914_s10   ;;  %s737_s9 = sphi %s763_s9, %s913_s9  }
   0x3   : > { %s37_s14 = ssub.s32 %s745_s11, %s780_s13  ;;  %s40_s15 = sadd.s32 1, %s741_s10 }
   0x4   : > { %p38_p0 = scmp.eq.s32.totalorder %s37_s14, 0  ;;  %p47_p1 = scmp.ne.s32.totalorder %s741_s10, %s737_s9 }
   0x5   : > { %p48_p2 = scmp.eq.s32.totalorder %s745_s11, 0  ;;  %p651_p4 = scmp.ge.s32.totalorder %s745_s11, 2 }
   0x6   : > { %s789_s16 = scalar_select %p38_p0, %s741_s10, %s40_s15  }
   0x7   : > { %p49_p3 = por %p48_p2, %p47_p1  ;;  %102 = sbr.rel (%p651_p4) target bundleno = 29 (0x1d), region = 20 }
   0xc   : > { %105 = sbr.rel (!%p49_p3) target bundleno = 29 (0x1d), region = 24  ;;  %s107_s17 = sand.u32 (%p49_p3), 1, %s741_s10  }
   0xd   : > { %s691_s18 = sshll.u32 (%p49_p3), %s745_s11, 5  ;;  %s696_s19 = smul.u32 (%p49_p3), 192, %s107_s17 }
   0xe   : > { %s797_s22 = scalar_lea.vmem (%p49_p3), %s911_s1, %s691_s18 }
   0xf   : > { %v125_v0 = vld [vmem:[%s797_s22] sm:$0xff] (%p49_p3)  ;;  %v127_v1 = vld [vmem:[%s797_s22 + $0x8] sm:$0xff] (%p49_p3)  ;;  %v129_v2 = vld [vmem:[%s797_s22 + $0x10] sm:$0xff] (%p49_p3)  ;;  %s805_s23 = scalar_lea.vmem (%p49_p3), [#allocation2], %s696_s19 }
  0x10   : > { %v131_v3 = vld [vmem:[%s797_s22 + $0x18] sm:$0xff] (%p49_p3)  ;;  %v133_v4 = vld [vmem:[%s797_s22 + $0x40] sm:$0xff] (%p49_p3)  ;;  %v135_v5 = vld [vmem:[%s797_s22 + $0x48] sm:$0xff] (%p49_p3)  ;;  %126 = vst [vmem:[%s805_s23] sm:$0xff] (%p49_p3), %v125_v0 }
  0x11   : > { %128 = vst [vmem:[%s805_s23 + $0x8] sm:$0xff] %v127_v1  ;;  %130 = vst [vmem:[%s805_s23 + $0x10] sm:$0xff] %v129_v2  ;;  %v137_v6 = vld [vmem:[%s797_s22 + $0x50] sm:$0xff]  ;;  %v139_v7 = vld [vmem:[%s797_s22 + $0x58] sm:$0xff] }
  0x12   : > { %132 = vst [vmem:[%s805_s23 + $0x18] sm:$0xff] %v131_v3  ;;  %134 = vst [vmem:[%s805_s23 + $0x20] sm:$0xff] %v133_v4  ;;  %v141_v8 = vld [vmem:[%s797_s22 + $0x80] sm:$0xff]  ;;  %v143_v9 = vld [vmem:[%s797_s22 + $0x88] sm:$0xff] }
  0x13   : > { %136 = vst [vmem:[%s805_s23 + $0x28] sm:$0xff] %v135_v5  ;;  %138 = vst [vmem:[%s805_s23 + $0x30] sm:$0xff] %v137_v6  ;;  %v145_v10 = vld [vmem:[%s797_s22 + $0x90] sm:$0xff]  ;;  %v147_v11 = vld [vmem:[%s797_s22 + $0x98] sm:$0xff] }
  0x14   : > { %140 = vst [vmem:[%s805_s23 + $0x38] sm:$0xff] %v139_v7  ;;  %142 = vst [vmem:[%s805_s23 + $0x40] sm:$0xff] %v141_v8  ;;  %v149_v12 = vld [vmem:[%s797_s22 + $0xc0] sm:$0xff]  ;;  %v151_v13 = vld [vmem:[%s797_s22 + $0xc8] sm:$0xff] }
  0x15   : > { %144 = vst [vmem:[%s805_s23 + $0x48] sm:$0xff] %v143_v9  ;;  %146 = vst [vmem:[%s805_s23 + $0x50] sm:$0xff] %v145_v10  ;;  %v153_v14 = vld [vmem:[%s797_s22 + $0xd0] sm:$0xff]  ;;  %v155_v15 = vld [vmem:[%s797_s22 + $0xd8] sm:$0xff] }
  0x16   : > { %148 = vst [vmem:[%s805_s23 + $0x58] sm:$0xff] %v147_v11  ;;  %150 = vst [vmem:[%s805_s23 + $0x60] sm:$0xff] %v149_v12  ;;  %v157_v16 = vld [vmem:[%s797_s22 + $0x100] sm:$0xff]  ;;  %v159_v17 = vld [vmem:[%s797_s22 + $0x108] sm:$0xff] }
  0x17   : > { %152 = vst [vmem:[%s805_s23 + $0x68] sm:$0xff] %v151_v13  ;;  %154 = vst [vmem:[%s805_s23 + $0x70] sm:$0xff] %v153_v14  ;;  %v161_v18 = vld [vmem:[%s797_s22 + $0x110] sm:$0xff]  ;;  %v163_v19 = vld [vmem:[%s797_s22 + $0x118] sm:$0xff] }
  0x18   : > { %156 = vst [vmem:[%s805_s23 + $0x78] sm:$0xff] %v155_v15  ;;  %158 = vst [vmem:[%s805_s23 + $0x80] sm:$0xff] %v157_v16  ;;  %v165_v20 = vld [vmem:[%s797_s22 + $0x140] sm:$0xff]  ;;  %v167_v21 = vld [vmem:[%s797_s22 + $0x148] sm:$0xff] }
  0x19   : > { %160 = vst [vmem:[%s805_s23 + $0x88] sm:$0xff] %v159_v17  ;;  %162 = vst [vmem:[%s805_s23 + $0x90] sm:$0xff] %v161_v18  ;;  %v169_v22 = vld [vmem:[%s797_s22 + $0x150] sm:$0xff]  ;;  %v171_v23 = vld [vmem:[%s797_s22 + $0x158] sm:$0xff] }
  0x1a   : > { %164 = vst [vmem:[%s805_s23 + $0x98] sm:$0xff] %v163_v19  ;;  %166 = vst [vmem:[%s805_s23 + $0xa0] sm:$0xff] %v165_v20 }
  0x1b   : > { %168 = vst [vmem:[%s805_s23 + $0xa8] sm:$0xff] %v167_v21  ;;  %170 = vst [vmem:[%s805_s23 + $0xb0] sm:$0xff] %v169_v22 }
  0x1c   : > { %172 = vst [vmem:[%s805_s23 + $0xb8] sm:$0xff] %v171_v23 }
  0x1d PF: > { %p654_p5 = scmp.ge.s32.totalorder %s745_s11, 1  ;;  %p177_p6 = scmp.lt.s32.totalorder %s745_s11, 3 }
  0x1f   : > { %p178_p7 = pnand %p654_p5, %p177_p6 }
  0x20   : > { %s184_s24 = sand.u32 (!%p178_p7), 1, %s737_s9   ;;  %s655_s29 = sshll.u32 (!%p178_p7), %s648_s12, 3 }
  0x21   : > { %181 = sbr.rel (%p178_p7) target bundleno = 267 (0x10b), region = 47  ;;  %p207_p8 = scmp.lt.s32.totalorder (!%p178_p7), %s655_s29, 15 }
  0x22   : > { %s697_s25 = smul.u32 (!%p178_p7), 192, %s184_s24 }
  0x24   : > { %s854_s26 = scalar_lea.vmem (!%p178_p7), [#allocation2], %s697_s25 }
  0x26   : > { %v747_v24 = vmov 0   ;;  %v230_v25 = vld [vmem:[%s854_s26 + $0x80] sm:$0xff]  ;;  %v231_v27 = vld [vmem:[%s854_s26 + $0x88] sm:$0xff]  ;;  %v232_v47 = vld [vmem:[%s854_s26 + $0x90] sm:$0xff]  ;;  %vm358_vm0 = vcmask 392192   ;;  %s917_s29 = smov (!%p207_p8, %s655_s29), 15 }
  0x27   : > { %394 = vmatprep.mubr.bf16.mxu0 %v747_v24  ;;  %435 = vmatprep.mubr.bf16.mxu1 %v747_v24  ;;  %v234_v26 = vld [vmem:[%s854_s26 + $0xa0] sm:$0xff]  ;;  %v235_v29 = vld [vmem:[%s854_s26 + $0xa8] sm:$0xff]  ;;  %v236_v48 = vld [vmem:[%s854_s26 + $0xb0] sm:$0xff]  ;;  %s656_s30 = sshll.u32 %s917_s29, 2 }
  0x28   : > { %v674_v28 = vcombine.high %v230_v25, %v234_v26  ;;  %v673_v30 = vcombine.low %v230_v25, %v234_v26  ;;  %v222_v31 = vld [vmem:[%s854_s26 + $0x40] sm:$0xff]  ;;  %v676_v33 = vcombine.high %v231_v27, %v235_v29  ;;  %v675_v34 = vcombine.low %v231_v27, %v235_v29  ;;  %v223_v36 = vld [vmem:[%s854_s26 + $0x48] sm:$0xff]  ;;  %v233_v49 = vld [vmem:[%s854_s26 + $0x98] sm:$0xff]  ;;  %s894_s5 = scalar_lea.vmem %s912_s2, %s656_s30 }
  0x29   : > { %v226_v32 = vld [vmem:[%s854_s26 + $0x60] sm:$0xff]  ;;  %v227_v37 = vld [vmem:[%s854_s26 + $0x68] sm:$0xff]  ;;  %v237_v50 = vld [vmem:[%s854_s26 + $0xb8] sm:$0xff]  ;;  %v678_v53 = vcombine.high %v232_v47, %v236_v48  ;;  %v677_v60 = vcombine.low %v232_v47, %v236_v48 }
  0x2a   : > { %v666_v35 = vcombine.high %v222_v31, %v226_v32  ;;  %v214_v38 = vld [vmem:[%s854_s26] sm:$0xff]  ;;  %372 = vmatprep.subr.bf16.mxu0 %v674_v28  ;;  %v668_v39 = vcombine.high %v223_v36, %v227_v37  ;;  %v215_v41 = vld [vmem:[%s854_s26 + $0x8] sm:$0xff]  ;;  %413 = vmatprep.subr.bf16.mxu1 %v676_v33  ;;  %v665_v43 = vcombine.low %v222_v31, %v226_v32  ;;  %v224_v55 = vld [vmem:[%s854_s26 + $0x50] sm:$0xff] }
  0x2b   : > { %v218_v40 = vld [vmem:[%s854_s26 + $0x20] sm:$0xff]  ;;  %v219_v42 = vld [vmem:[%s854_s26 + $0x28] sm:$0xff]  ;;  %373 = vmatpush1.bf16.msra.mxu0 %v673_v30  ;;  %414 = vmatpush1.bf16.msra.mxu1 %v675_v34  ;;  %v667_v44 = vcombine.low %v223_v36, %v227_v37  ;;  %v680_v54 = vcombine.high %v233_v49, %v237_v50  ;;  %v228_v56 = vld [vmem:[%s854_s26 + $0x70] sm:$0xff]  ;;  %v679_v61 = vcombine.low %v233_v49, %v237_v50 }
  0x2c   : > { %374 = vmatprep.subr.bf16.mxu0 %v666_v35  ;;  %v658_v45 = vcombine.high %v214_v38, %v218_v40  ;;  %415 = vmatprep.subr.bf16.mxu1 %v668_v39  ;;  %v660_v46 = vcombine.high %v215_v41, %v219_v42  ;;  %v657_v51 = vcombine.low %v214_v38, %v218_v40  ;;  %v225_v57 = vld [vmem:[%s854_s26 + $0x58] sm:$0xff]  ;;  %v213_v59 = vld [vmem:[%s910_s0] sm:$0xf]  ;;  %v216_v0 = vld [vmem:[%s854_s26 + $0x10] sm:$0xff] }
  0x2d   : > { %v659_v52 = vcombine.low %v215_v41, %v219_v42  ;;  %v229_v58 = vld [vmem:[%s854_s26 + $0x78] sm:$0xff]  ;;  %v670_v62 = vcombine.high %v224_v55, %v228_v56  ;;  %v220_v1 = vld [vmem:[%s854_s26 + $0x30] sm:$0xff]  ;;  %v669_v4 = vcombine.low %v224_v55, %v228_v56 }
  0x2e   : > { %v672_v63 = vcombine.high %v225_v57, %v229_v58  ;;  %v217_v2 = vld [vmem:[%s854_s26 + $0x18] sm:$0xff]  ;;  %v671_v5 = vcombine.low %v225_v57, %v229_v58  ;;  %v662_v6 = vcombine.high %v216_v0, %v220_v1  ;;  %v661_v8 = vcombine.low %v216_v0, %v220_v1 }
  0x2f   : > { %375 = vmatpush1.bf16.msra.mxu0 %v665_v43  ;;  %416 = vmatpush1.bf16.msra.mxu1 %v667_v44  ;;  %v221_v3 = vld [vmem:[%s854_s26 + $0x38] sm:$0xff] }
  0x30   : > { %376 = vmatprep.subr.bf16.mxu0 %v658_v45  ;;  %417 = vmatprep.subr.bf16.mxu1 %v660_v46  ;;  %v664_v7 = vcombine.high %v217_v2, %v221_v3  ;;  %v663_v9 = vcombine.low %v217_v2, %v221_v3 }
  0x33   : > { %377 = vmatpush1.bf16.msra.mxu0 %v657_v51  ;;  %418 = vmatpush1.bf16.msra.mxu1 %v659_v52 }
  0x34   : > { %454 = vmatprep.subr.bf16.mxu0 %v678_v53  ;;  %495 = vmatprep.subr.bf16.mxu1 %v680_v54 }
  0x36   : > { %681 = vmatmul.mubr.msk.bf16.vlgmr.msra.gmra.mxu0 %vm358_vm0, %v213_v59  ;;  %682 = vmatmul.mubr.msk.bf16.vlgmr.msra.gmra.mxu1 %vm358_vm0, %v213_v59 }
  0x37   : > { %455 = vmatpush1.bf16.msra.mxu0 %v677_v60  ;;  %496 = vmatpush1.bf16.msra.mxu1 %v679_v61 }
  0x38   : > { %456 = vmatprep.subr.bf16.mxu0 %v670_v62  ;;  %497 = vmatprep.subr.bf16.mxu1 %v672_v63 }
  0x39   : > { %476 = vmatprep.mubr.bf16.mxu0 %v747_v24  ;;  %517 = vmatprep.mubr.bf16.mxu1 %v747_v24 }
  0x3b   : > { %457 = vmatpush1.bf16.msra.mxu0 %v669_v4  ;;  %498 = vmatpush1.bf16.msra.mxu1 %v671_v5 }
  0x3c   : > { %458 = vmatprep.subr.bf16.mxu0 %v662_v6  ;;  %499 = vmatprep.subr.bf16.mxu1 %v664_v7 }
  0x3f   : > { %459 = vmatpush1.bf16.msra.mxu0 %v661_v8  ;;  %500 = vmatpush1.bf16.msra.mxu1 %v663_v9 }
  0x42   : > { %683 = vmatmul.mubr.msk.bf16.vlgmr.msra.gmra.mxu0 %vm358_vm0, %v213_v59  ;;  %684 = vmatmul.mubr.msk.bf16.vlgmr.msra.gmra.mxu1 %vm358_vm0, %v213_v59 }
  0xf6   : > { %v396_v10 = vpop.f32.mrf.mxu0  ;;  %v437_v12 = vpop.f32.mrf.mxu1 }
  0xf7   : > { %v534_v11 = vmul.f32 0.2, %v396_v10  ;;  %vm526_vm1 = vcmp.gt.f32.partialorder %v396_v10, 0.0  ;;  %v536_v13 = vmul.f32 0.2, %v437_v12  ;;  %vm528_vm2 = vcmp.gt.f32.partialorder %v437_v12, 0.0 }
  0xf8   : > { %v398_v14 = vpop.f32.mrf.mxu0  ;;  %v439_v16 = vpop.f32.mrf.mxu1 }
  0xf9   : > { %vm527_vm3 = vcmp.gt.f32.partialorder %v398_v14, 0.0  ;;  %v535_v15 = vmul.f32 0.2, %v398_v14  ;;  %vm529_vm4 = vcmp.gt.f32.partialorder %v439_v16, 0.0  ;;  %v537_v17 = vmul.f32 0.2, %v439_v16 }
  0xfa   : > { %v400_v18 = vpop.f32.mrf.mxu0  ;;  %v542_v19 = vsel %vm526_vm1, %v396_v10, %v534_v11  ;;  %v441_v21 = vpop.f32.mrf.mxu1  ;;  %v544_v22 = vsel %vm528_vm2, %v437_v12, %v536_v13 }
  0xfb   : > { %v543_v20 = vsel %vm527_vm3, %v398_v14, %v535_v15  ;;  %v545_v24 = vsel %vm529_vm4, %v439_v16, %v537_v17 }
  0xfc   : > { %v692_v23 = vpack.c.bf16 %v543_v20, %v542_v19  ;;  %v401_v25 = vpop.f32.mrf.mxu0  ;;  %v693_v26 = vpack.c.bf16 %v545_v24, %v544_v22  ;;  %v442_v27 = vpop.f32.mrf.mxu1 }
  0xfe   : > { %582 = vst [vmem:[%s894_s5] sm:$0xff] %v692_v23  ;;  %583 = vst [vmem:[%s894_s5 + $0x8] sm:$0xff] %v693_v26 }
 0x102   : > { %v478_v28 = vpop.f32.mrf.mxu0  ;;  %v519_v30 = vpop.f32.mrf.mxu1 }
 0x103   : > { %v538_v29 = vmul.f32 0.2, %v478_v28  ;;  %vm530_vm5 = vcmp.gt.f32.partialorder %v478_v28, 0.0  ;;  %v540_v31 = vmul.f32 0.2, %v519_v30  ;;  %vm532_vm6 = vcmp.gt.f32.partialorder %v519_v30, 0.0 }
 0x104   : > { %v480_v32 = vpop.f32.mrf.mxu0  ;;  %v521_v34 = vpop.f32.mrf.mxu1 }
 0x105   : > { %vm531_vm7 = vcmp.gt.f32.partialorder %v480_v32, 0.0  ;;  %v539_v33 = vmul.f32 0.2, %v480_v32  ;;  %vm533_vm8 = vcmp.gt.f32.partialorder %v521_v34, 0.0  ;;  %v541_v35 = vmul.f32 0.2, %v521_v34 }
 0x106   : > { %v482_v36 = vpop.f32.mrf.mxu0  ;;  %v546_v37 = vsel %vm530_vm5, %v478_v28, %v538_v29  ;;  %v523_v39 = vpop.f32.mrf.mxu1  ;;  %v548_v40 = vsel %vm532_vm6, %v519_v30, %v540_v31 }
 0x107   : > { %v547_v38 = vsel %vm531_vm7, %v480_v32, %v539_v33  ;;  %v549_v42 = vsel %vm533_vm8, %v521_v34, %v541_v35 }
 0x108   : > { %v694_v41 = vpack.c.bf16 %v547_v38, %v546_v37  ;;  %v483_v43 = vpop.f32.mrf.mxu0  ;;  %v695_v44 = vpack.c.bf16 %v549_v42, %v548_v40  ;;  %v524_v45 = vpop.f32.mrf.mxu1 }
 0x10a   : > { %584 = vst [vmem:[%s894_s5 + $0x10] sm:$0xff] %v694_v41  ;;  %585 = vst [vmem:[%s894_s5 + $0x18] sm:$0xff] %v695_v44 }
 0x10b PF: > { %p9_p9 = scmp.ge.s32.totalorder %s780_s13, 4   ;;  %s913_s9 = smov %s741_s10 }
 0x10c   : > { %s914_s10 = smov %s789_s16  ;;  %s915_s11 = smov %s780_s13 }
 0x10d   :  { %11 = sbr.rel (!%p9_p9) target bundleno = 2 (0x2), region = 86 }

// kernel: discriminator_forward.4
= control target key start
LH: loop header
LB: loop body
LE: loop exit
PB: predicated region body
PF: predicated region fallthrough
CT: control target
= control target key end

     0   :  { %s979_s15 = smov 0   ;;  %s981_s16 = smov 0   ;;  %s1171_s0 = inlined_call_operand.vmem [shape: bf16[16,128], index: 0, kind: input, shape index: {}]   ;;  %s1172_s1 = inlined_call_operand.vmem [shape: f32[16,1], index: 1, kind: input, shape index: {}]   ;;  %s1173_s2 = inlined_call_operand.vmem [shape: f32[16,1], index: 2, kind: input, shape index: {}]   ;;  %s1174_s3 = inlined_call_operand.vmem [shape: bf16[128,512], index: 3, kind: input, shape index: {}]   ;;  %s1175_s4 = inlined_call_operand.vmem [shape: bf16[16,512], index: 4, kind: output, shape index: {}]  }
   0x1   :  { %s983_s17 = smov 0   ;;  %s985_s18 = smov 0  }
   0x2   :  { %s987_s19 = smov 0   ;;  %s989_s20 = smov 0  }
   0x3   :  { %s991_s21 = smov 0   ;;  %s993_s22 = smov 0  }
   0x4   :  { %s995_s23 = smov 0  }
   0x5 LB: > { %s727_s24 = sadd.s32 4294967295, %s949_s23   ;;  %s23_s25 = sadd.s32 1, %s941_s21  ;;  %s949_s23 = sphi %s995_s23, %s14_s23   ;;  %s945_s22 = sphi %s993_s22, %s1185_s22   ;;  %s941_s21 = sphi %s991_s21, %s1184_s21   ;;  %s937_s20 = sphi %s989_s20, %s1183_s20   ;;  %s933_s19 = sphi %s987_s19, %s1182_s19   ;;  %s929_s18 = sphi %s985_s18, %s1181_s18   ;;  %s925_s17 = sphi %s983_s17, %s1180_s17   ;;  %s921_s16 = sphi %s981_s16, %s1179_s16   ;;  %s917_s15 = sphi %s979_s15, %s1178_s15  }
   0x6   : > { %p24_p0 = scmp.ge.s32.totalorder %s23_s25, 2  ;;  %s26_s26 = sadd.s32 1, %s945_s22 }
   0x7   : > { %s93_s27 = ssub.s32 1, %s945_s22  ;;  %s102_s28 = sadd.s32 1, %s929_s18 }
   0x8   : > { %s1187_s25 = smov (%p24_p0, %s23_s25), 0  ;;  %s1189_s26 = smov (!%p24_p0, %s26_s26), %s945_s22 }
   0x9   : > { %s94_s29 = smul.u32 %s941_s21, %s93_s27  ;;  %p109_p1 = scmp.ne.s32.totalorder %s929_s18, %s925_s17 }
   0xa   : > { %p28_p2 = scmp.ge.s32.totalorder %s1189_s26, 2  ;;  %p110_p3 = scmp.eq.s32.totalorder %s949_s23, 0 }
   0xb   : > { %s95_s30 = sadd.s32 %s945_s22, %s94_s29  ;;  %s125_s5 = smul.u32 %s941_s21, %s945_s22 }
   0xc   : > { %s1191_s26 = smov (%p28_p2, %s1189_s26), 0  ;;  %p1041_p4 = por %p110_p3, %p109_p1 }
   0xd   : > { %s130_s7 = sadd.s32 1, %s921_s16  ;;  %s96_s8 = ssub.s32 1, %s1191_s26 }
   0xe   : > { %s126_s9 = smul.u32 %s1191_s26, %s1187_s25  ;;  %p140_p5 = scmp.ne.s32.totalorder %s921_s16, %s917_s15 }
   0xf   : > { %s97_s10 = smul.u32 %s96_s8, %s1187_s25  ;;  %p141_p6 = scmp.eq.s32.totalorder %s727_s24, 3 }
  0x10   : > { %s127_s11 = ssub.s32 %s125_s5, %s126_s9  ;;  %p730_p10 = scmp.ge.s32.totalorder %s949_s23, 4 }
  0x11   : > { %s98_s12 = sadd.s32 %s97_s10, %s1191_s26  ;;  %p128_p7 = scmp.eq.s32.totalorder %s127_s11, 0 }
  0x12   : > { %s99_s13 = ssub.s32 %s95_s30, %s98_s12  ;;  %p1053_p8 = por %p141_p6, %p140_p5 }
  0x13   : > { %p100_p9 = scmp.eq.s32.totalorder %s99_s13, 0  ;;  %172 = sbr.rel (%p730_p10) target bundleno = 36 (0x24), region = 28 }
  0x14   : > { %s1058_s27 = scalar_select %p128_p7, %s921_s16, %s130_s7  }
  0x15   : > { %s1061_s29 = scalar_select %p100_p9, %s929_s18, %s102_s28  }
  0x18   : > { %175 = sbr.rel (!%p1041_p4) target bundleno = 36 (0x24), region = 32  ;;  %s177_s24 = sand.u32 (%p1041_p4), 1, %s929_s18  }
  0x19   : > { %s767_s5 = sshll.u32 (%p1041_p4), %s95_s30, 3  ;;  %s731_s8 = sshll.u32 (%p1041_p4), %s177_s24, 7 }
  0x1a   : > { %s1070_s11 = scalar_lea.vmem (%p1041_p4), %s1174_s3, %s767_s5  ;;  %s179_s28 = scalar_lea.vmem (%p1041_p4), [#allocation5], %s731_s8 }
  0x1b   : > { %v244_v0 = vld [vmem:[%s1070_s11] sm:$0xff] (%p1041_p4)  ;;  %v246_v1 = vld [vmem:[%s1070_s11 + $0x10] sm:$0xff] (%p1041_p4) }
  0x1c   : > { %v248_v2 = vld [vmem:[%s1070_s11 + $0x20] sm:$0xff] (%p1041_p4)  ;;  %245 = vst [vmem:[%s179_s28] sm:$0xff] (%p1041_p4), %v244_v0  ;;  %247 = vst [vmem:[%s179_s28 + $0x8] sm:$0xff] (%p1041_p4), %v246_v1  ;;  %v250_v3 = vld [vmem:[%s1070_s11 + $0x30] sm:$0xff] (%p1041_p4) }
  0x1d   : > { %249 = vst [vmem:[%s179_s28 + $0x10] sm:$0xff] %v248_v2  ;;  %v252_v4 = vld [vmem:[%s1070_s11 + $0x40] sm:$0xff]  ;;  %v254_v5 = vld [vmem:[%s1070_s11 + $0x50] sm:$0xff]  ;;  %251 = vst [vmem:[%s179_s28 + $0x18] sm:$0xff] %v250_v3 }
  0x1e   : > { %253 = vst [vmem:[%s179_s28 + $0x20] sm:$0xff] %v252_v4  ;;  %255 = vst [vmem:[%s179_s28 + $0x28] sm:$0xff] %v254_v5  ;;  %v256_v6 = vld [vmem:[%s1070_s11 + $0x60] sm:$0xff]  ;;  %v258_v7 = vld [vmem:[%s1070_s11 + $0x70] sm:$0xff] }
  0x1f   : > { %v260_v8 = vld [vmem:[%s1070_s11 + $0x80] sm:$0xff]  ;;  %257 = vst [vmem:[%s179_s28 + $0x30] sm:$0xff] %v256_v6  ;;  %259 = vst [vmem:[%s179_s28 + $0x38] sm:$0xff] %v258_v7  ;;  %v262_v9 = vld [vmem:[%s1070_s11 + $0x90] sm:$0xff] }
  0x20   : > { %261 = vst [vmem:[%s179_s28 + $0x40] sm:$0xff] %v260_v8  ;;  %v264_v10 = vld [vmem:[%s1070_s11 + $0xa0] sm:$0xff]  ;;  %v266_v11 = vld [vmem:[%s1070_s11 + $0xb0] sm:$0xff]  ;;  %263 = vst [vmem:[%s179_s28 + $0x48] sm:$0xff] %v262_v9 }
  0x21   : > { %265 = vst [vmem:[%s179_s28 + $0x50] sm:$0xff] %v264_v10  ;;  %267 = vst [vmem:[%s179_s28 + $0x58] sm:$0xff] %v266_v11  ;;  %v268_v12 = vld [vmem:[%s1070_s11 + $0xc0] sm:$0xff]  ;;  %v270_v13 = vld [vmem:[%s1070_s11 + $0xd0] sm:$0xff] }
  0x22   : > { %v272_v14 = vld [vmem:[%s1070_s11 + $0xe0] sm:$0xff]  ;;  %269 = vst [vmem:[%s179_s28 + $0x60] sm:$0xff] %v268_v12  ;;  %271 = vst [vmem:[%s179_s28 + $0x68] sm:$0xff] %v270_v13  ;;  %v274_v15 = vld [vmem:[%s1070_s11 + $0xf0] sm:$0xff] }
  0x23   : > { %273 = vst [vmem:[%s179_s28 + $0x70] sm:$0xff] %v272_v14  ;;  %275 = vst [vmem:[%s179_s28 + $0x78] sm:$0xff] %v274_v15 }
  0x24 PF: > { %p734_p11 = scmp.ge.s32.totalorder %s949_s23, 1  ;;  %p280_p12 = scmp.lt.s32.totalorder %s949_s23, 5 }
  0x26   : > { %p281_p13 = pnand %p734_p11, %p280_p12 }
  0x27   : > { %s287_s30 = sand.u32 (!%p281_p13), 1, %s925_s17   ;;  %s308_s6 = sand.u32 (!%p281_p13), 1, %s917_s15  }
  0x28   : > { %284 = sbr.rel (%p281_p13) target bundleno = 618 (0x26a), region = 70  ;;  %s735_s7 = sshll.u32 (!%p281_p13), %s287_s30, 7 }
  0x29   : > { %s736_s12 = sshll.u32 (!%p281_p13), %s308_s6, 4  ;;  %p318_p0 = scmp.eq.s32.totalorder (!%p281_p13), %s937_s20, 0 }
  0x2a   : > { %p319_p1 = scmp.eq.s32.totalorder (!%p281_p13), %s933_s19, 0  ;;  %s1094_s13 = scalar_lea.vmem (!%p281_p13), [#allocation5], %s735_s7 }
  0x2b   : > { %s1096_s24 = scalar_lea.vmem (!%p281_p13), [#allocation6], %s736_s12 }
  0x2c   : > { %p320_p2 = pnand (!%p281_p13), %p319_p1, %p318_p0 }
  0x2e   : > { %323 = sbr.rel (%p320_p2) target bundleno = 54 (0x36), region = 78 }
  0x33   : > { %vm324_vm0 = vcmask 7168   ;;  %v951_v16 = vmov 0.0  }
  0x34   : > { %325 = vst.msk [vmem:[#allocation3] sm:$0xff] %vm324_vm0, %v951_v16  ;;  %326 = vst.msk [vmem:[#allocation3 + $0x8] sm:$0xff] %vm324_vm0, %v951_v16 }
  0x35   : > { %327 = vst.msk [vmem:[#allocation4] sm:$0xff] %vm324_vm0, %v951_v16  ;;  %328 = vst.msk [vmem:[#allocation4 + $0x8] sm:$0xff] %vm324_vm0, %v951_v16 }
  0x36 PF: > { %p737_p3 = scmp.ne.s32.totalorder %s937_s20, 0 }
  0x37   : > { %s768_s5 = sshll.u32 (!%p737_p3), %s933_s19, 5 }
  0x38   : > { %331 = sbr.rel (%p737_p3) target bundleno = 438 (0x1b6), region = 82  ;;  %s481_s8 = scalar_lea.vmem (!%p737_p3), [#allocation2], %s768_s5 }
  0x3d   : > { %v848_v17 = vld [vmem:[%s1094_s13 + $0x74] ss:$8 sps:$4 sm:$0xff]   ;;  %v850_v18 = vld [vmem:[%s1094_s13 + $0x70] ss:$8 sps:$4 sm:$0xff]   ;;  %v952_v19 = vmov 0   ;;  %v872_v34 = vld [vmem:[%s1171_s0] sm:$0xff]  }
  0x3e   : > { %468 = vmatprep.mubr.bf16.mxu0 %v952_v19  ;;  %436 = vmatprep.subr.bf16.mxu0 %v848_v17  ;;  %v851_v20 = vld [vmem:[%s1094_s13 + $0x64] ss:$8 sps:$4 sm:$0xff]   ;;  %v853_v21 = vld [vmem:[%s1094_s13 + $0x60] ss:$8 sps:$4 sm:$0xff]   ;;  %v854_v22 = vld [vmem:[%s1094_s13 + $0x54] ss:$8 sps:$4 sm:$0xff]  }
  0x3f   : > { %437 = vmatpush1.bf16.msra.mxu0 %v850_v18  ;;  %v856_v23 = vld [vmem:[%s1094_s13 + $0x50] ss:$8 sps:$4 sm:$0xff]   ;;  %v857_v24 = vld [vmem:[%s1094_s13 + $0x44] ss:$8 sps:$4 sm:$0xff]   ;;  %v859_v25 = vld [vmem:[%s1094_s13 + $0x40] ss:$8 sps:$4 sm:$0xff]  }
  0x40   : > { %438 = vmatprep.subr.bf16.mxu0 %v851_v20  ;;  %v860_v26 = vld [vmem:[%s1094_s13 + $0x34] ss:$8 sps:$4 sm:$0xff]   ;;  %v862_v27 = vld [vmem:[%s1094_s13 + $0x30] ss:$8 sps:$4 sm:$0xff]   ;;  %v863_v28 = vld [vmem:[%s1094_s13 + $0x24] ss:$8 sps:$4 sm:$0xff]  }
  0x41   : > { %v865_v29 = vld [vmem:[%s1094_s13 + $0x20] ss:$8 sps:$4 sm:$0xff]   ;;  %v866_v30 = vld [vmem:[%s1094_s13 + $0x14] ss:$8 sps:$4 sm:$0xff]   ;;  %v868_v31 = vld [vmem:[%s1094_s13 + $0x10] ss:$8 sps:$4 sm:$0xff]  }
  0x42   : > { %v869_v32 = vld [vmem:[%s1094_s13 + $0x4] ss:$8 sps:$4 sm:$0xff]   ;;  %v871_v33 = vld [vmem:[%s1094_s13] ss:$8 sps:$4 sm:$0xff]   ;;  %vm496_vm1 = vcmask 7168   ;;  %v499_v49 = vld [vmem:[#allocation4] sm:$0xff] }
  0x43   : > { %439 = vmatpush1.bf16.msra.mxu0 %v853_v21  ;;  %v486_v47 = vld [vmem:[#allocation3] sm:$0xff]  ;;  %v487_v52 = vld [vmem:[#allocation3 + $0x8] sm:$0xff]  ;;  %v500_v55 = vld [vmem:[#allocation4 + $0x8] sm:$0xff] }
  0x44   : > { %440 = vmatprep.subr.bf16.mxu0 %v854_v22 }
  0x47   : > { %441 = vmatpush1.bf16.msra.mxu0 %v856_v23 }
  0x48   : > { %442 = vmatprep.subr.bf16.mxu0 %v857_v24 }
  0x4b   : > { %443 = vmatpush1.bf16.msra.mxu0 %v859_v25 }
  0x4c   : > { %444 = vmatprep.subr.bf16.mxu0 %v860_v26 }
  0x4f   : > { %445 = vmatpush1.bf16.msra.mxu0 %v862_v27 }
  0x50   : > { %446 = vmatprep.subr.bf16.mxu0 %v863_v28 }
  0x53   : > { %447 = vmatpush1.bf16.msra.mxu0 %v865_v29 }
  0x54   : > { %448 = vmatprep.subr.bf16.mxu0 %v866_v30 }
  0x57   : > { %449 = vmatpush1.bf16.msra.mxu0 %v868_v31 }
  0x58   : > { %450 = vmatprep.subr.bf16.mxu0 %v869_v32 }
  0x5b   : > { %451 = vmatpush1.bf16.msra.mxu0 %v871_v33 }
  0x5e   : > { %469 = vmatmul.mubr.bf16.vlgmr.msra.gmra.mxu0 %v872_v34 }
 0x11e   : > { %v470_v35 = vpop.f32.mrf.mxu0 }
 0x11f   : > { %482 = vst [vmem:[%s481_s8] sm:$0xff] %v470_v35  ;;  %v501_v38 = vmul.f32 %v470_v35, %v470_v35 }
 0x120   : > { %v472_v36 = vpop.f32.mrf.mxu0 }
 0x121   : > { %483 = vst [vmem:[%s481_s8 + $0x8] sm:$0xff] %v472_v36  ;;  %v488_v37 = vadd.f32 %v472_v36, %v470_v35  ;;  %v502_v39 = vmul.f32 %v472_v36, %v472_v36 }
 0x122   : > { %v474_v40 = vpop.f32.mrf.mxu0 }
 0x123   : > { %484 = vst [vmem:[%s481_s8 + $0x10] sm:$0xff] %v474_v40  ;;  %489 = vadd.xlane.f32.xlu0 %v488_v37  ;;  %v505_v41 = vadd.f32 %v502_v39, %v501_v38  ;;  %v503_v45 = vmul.f32 %v474_v40, %v474_v40 }
 0x124   : > { %v476_v42 = vpop.f32.mrf.mxu0 }
 0x125   : > { %485 = vst [vmem:[%s481_s8 + $0x18] sm:$0xff] %v476_v42  ;;  %v504_v43 = vmul.f32 %v476_v42, %v476_v42  ;;  %506 = vadd.xlane.f32.xlu1 %v505_v41  ;;  %v491_v44 = vadd.f32 %v476_v42, %v474_v40 }
 0x127   : > { %492 = vadd.xlane.f32.xlu0 %v491_v44  ;;  %v508_v46 = vadd.f32 %v504_v43, %v503_v45 }
 0x129   : > { %509 = vadd.xlane.f32.xlu1 %v508_v46 }
 0x1ac   : > { %v490_v48 = vpop.xlane.xlu0 %489 }
 0x1ad   : > { %v494_v50 = vadd.f32 %v490_v48, %v486_v47 }
 0x1ae   : > { %v507_v51 = vpop.xlane.xlu1 %506 }
 0x1af   : > { %497 = vst.msk [vmem:[#allocation3] sm:$0xff] %vm496_vm1, %v494_v50  ;;  %v511_v53 = vadd.f32 %v507_v51, %v499_v49 }
 0x1b0   : > { %v493_v54 = vpop.xlane.xlu0 %492 }
 0x1b1   : > { %513 = vst.msk [vmem:[#allocation4] sm:$0xff] %vm496_vm1, %v511_v53  ;;  %v495_v56 = vadd.f32 %v493_v54, %v487_v52 }
 0x1b2   : > { %v510_v57 = vpop.xlane.xlu1 %509 }
 0x1b3   : > { %498 = vst.msk [vmem:[#allocation3 + $0x8] sm:$0xff] %vm496_vm1, %v495_v56  ;;  %v512_v58 = vadd.f32 %v510_v57, %v500_v55 }
 0x1b5   : > { %514 = vst.msk [vmem:[#allocation4 + $0x8] sm:$0xff] %vm496_vm1, %v512_v58 }
 0x1b6 PF: > { %p757_p4 = scmp.ne.s32.totalorder %s937_s20, 1 }
 0x1b7   : > { %s769_s13 = sshll.u32 (!%p757_p4), %s933_s19, 5 }
 0x1b8   : > { %518 = sbr.rel (%p757_p4) target bundleno = 610 (0x262), region = 86  ;;  %s547_s15 = scalar_lea.vmem (!%p757_p4), [#allocation2], %s769_s13 }
 0x1bd   : > { %v519_v59 = vld [vmem:[#allocation3] sm:$0xff]  ;;  %v523_v60 = vld [vmem:[#allocation4] sm:$0xff]  ;;  %v953_v61 = vmov 0   ;;  %v520_v0 = vld [vmem:[#allocation3 + $0x8] sm:$0xff] }
 0x1be   : > { %873 = vset.pattern.permute.xlu0 %v953_v61  ;;  %v521_v62 = vmul.f32 0.001953125, %v519_v59  ;;  %v525_v63 = vmul.f32 0.001953125, %v523_v60  ;;  %874 = vset.pattern.permute.xlu1 %v953_v61  ;;  %v524_v1 = vld [vmem:[#allocation4 + $0x8] sm:$0xff]  ;;  %v522_v2 = vmul.f32 0.001953125, %v520_v0  ;;  %v531_v10 = vld [vmem:[%s1172_s1] sm:$0xff]  ;;  %v532_v11 = vld [vmem:[%s1172_s1 + $0x8] sm:$0xff] }
 0x1bf   : > { %v526_v3 = vmul.f32 0.001953125, %v524_v1  ;;  %v539_v16 = vld [vmem:[%s1173_s2] sm:$0xff]  ;;  %v540_v18 = vld [vmem:[%s1173_s2 + $0x8] sm:$0xff]  ;;  %v550_v27 = vld [vmem:[%s547_s15 + $0x10] sm:$0xff] }
 0x1c0   : > { %v527_v4 = vmul.f32 %v521_v62, %v521_v62  ;;  %v528_v5 = vmul.f32 %v522_v2, %v522_v2  ;;  %v548_v22 = vld [vmem:[%s547_s15] sm:$0xff]  ;;  %v549_v23 = vld [vmem:[%s547_s15 + $0x8] sm:$0xff]  ;;  %v551_v28 = vld [vmem:[%s547_s15 + $0x18] sm:$0xff] }
 0x1c2   : > { %v529_v6 = vsub.f32 %v525_v63, %v527_v4  ;;  %v530_v7 = vsub.f32 %v526_v3, %v528_v5 }
 0x1c4   : > { %v533_v8 = vadd.f32 1e-05, %v529_v6  ;;  %v534_v9 = vadd.f32 1e-05, %v530_v7 }
 0x1c6   : > { %875 = vrsqrt.f32 %v533_v8 }
 0x1c7   : > { %877 = vrsqrt.f32 %v534_v9 }
 0x1d3   : > { %v876_v12 = vpop.eup %875 }
 0x1d4   : > { %v878_v13 = vpop.eup %877  ;;  %v537_v14 = vmul.f32 %v876_v12, %v531_v10 }
 0x1d5   : > { %v538_v15 = vmul.f32 %v878_v13, %v532_v11 }
 0x1d6   : > { %554 = vperm.xlu0 %873, %v537_v14   ;;  %v541_v17 = vmul.f32 %v537_v14, %v521_v62 }
 0x1d7   : > { %v542_v19 = vmul.f32 %v538_v15, %v522_v2 }
 0x1d8   : > { %v543_v20 = vsub.f32 %v539_v16, %v541_v17 }
 0x1d9   : > { %v544_v21 = vsub.f32 %v540_v18, %v542_v19 }
 0x1da   : > { %559 = vperm.xlu0 %873, %v538_v15   ;;  %568 = vperm.xlu1 %874, %v543_v20  }
 0x1de   : > { %573 = vperm.xlu1 %874, %v544_v21  }
 0x251   : > { %v555_v24 = vpop.permute.xlu0 %554 }
 0x252   : > { %v562_v25 = vmul.f32 %v555_v24, %v548_v22  ;;  %v563_v26 = vmul.f32 %v555_v24, %v549_v23 }
 0x255   : > { %v560_v29 = vpop.permute.xlu0 %559  ;;  %v569_v30 = vpop.permute.xlu1 %568 }
 0x256   : > { %v576_v31 = vadd.f32 %v569_v30, %v562_v25  ;;  %v577_v32 = vadd.f32 %v569_v30, %v563_v26  ;;  %v564_v33 = vmul.f32 %v560_v29, %v550_v27  ;;  %v565_v34 = vmul.f32 %v560_v29, %v551_v28 }
 0x258   : > { %vm580_vm2 = vcmp.gt.f32.partialorder %v576_v31, 0.0  ;;  %vm581_vm3 = vcmp.gt.f32.partialorder %v577_v32, 0.0  ;;  %v584_v35 = vmul.f32 0.2, %v576_v31  ;;  %v585_v36 = vmul.f32 0.2, %v577_v32 }
 0x259   : > { %v574_v37 = vpop.permute.xlu1 %573 }
 0x25a   : > { %v588_v38 = vsel %vm580_vm2, %v576_v31, %v584_v35  ;;  %v589_v39 = vsel %vm581_vm3, %v577_v32, %v585_v36  ;;  %v578_v40 = vadd.f32 %v574_v37, %v564_v33  ;;  %v579_v41 = vadd.f32 %v574_v37, %v565_v34 }
 0x25b   : > { %v770_v42 = vpack.c.bf16 %v589_v39, %v588_v38 }
 0x25c   : > { %vm582_vm4 = vcmp.gt.f32.partialorder %v578_v40, 0.0  ;;  %vm583_vm5 = vcmp.gt.f32.partialorder %v579_v41, 0.0  ;;  %v586_v43 = vmul.f32 0.2, %v578_v40  ;;  %v587_v44 = vmul.f32 0.2, %v579_v41 }
 0x25d   : > { %604 = vst [vmem:[%s1096_s24] sm:$0xff] %v770_v42 }
 0x25e   : > { %v590_v45 = vsel %vm582_vm4, %v578_v40, %v586_v43  ;;  %v591_v46 = vsel %vm583_vm5, %v579_v41, %v587_v44 }
 0x25f   : > { %v771_v47 = vpack.c.bf16 %v591_v46, %v590_v45 }
 0x261   : > { %605 = vst [vmem:[%s1096_s24 + $0x8] sm:$0xff] %v771_v47 }
 0x262 PF: > { %612 = sbr.rel (!%p1053_p8) target bundleno = 618 (0x26a), region = 90 }
 0x263   : > { %s613_s17 = smul.u32 (%p1053_p8), %s933_s19, %s937_s20 }
 0x264   : > { %v647_v48 = vld [vmem:[%s1096_s24] sm:$0xff] (%p1053_p8) }
 0x265   : > { %s772_s5 = sshll.u32 (%p1053_p8), %s613_s17, 3 }
 0x266   : > { %s616_s10 = scalar_lea.vmem (%p1053_p8), %s1175_s4, %s772_s5 }
 0x267   : > { %648 = vst [vmem:[%s616_s10] sm:$0xff] %v647_v48 }
 0x268   : > { %v649_v49 = vld [vmem:[%s1096_s24 + $0x8] sm:$0xff] }
 0x269   : > { %650 = vst [vmem:[%s616_s10 + $0x10] sm:$0xff] %v649_v49 }
 0x26a PF: > { %s14_s23 = sadd.s32 1, %s949_s23   ;;  %s1178_s15 = smov %s921_s16 }
 0x26b   : > { %p11_p5 = scmp.ge.s32.totalorder %s14_s23, 6   ;;  %s1179_s16 = smov %s1058_s27 }
 0x26c   : > { %s1180_s17 = smov %s929_s18  ;;  %s1181_s18 = smov %s1061_s29 }
 0x26d   : > { %s1182_s19 = smov %s941_s21  ;;  %s1183_s20 = smov %s945_s22 }
 0x26e   : > { %s1184_s21 = smov %s1187_s25  ;;  %s1185_s22 = smov %s1191_s26 }
 0x26f   :  { %13 = sbr.rel (!%p11_p5) target bundleno = 5 (0x5), region = 161 }

// kernel: discriminator_forward.5
= control target key start
LH: loop header
LB: loop body
LE: loop exit
PB: predicated region body
PF: predicated region fallthrough
CT: control target
= control target key end

     0   :  { %s912_s15 = smov 0   ;;  %s914_s16 = smov 0   ;;  %s1042_s0 = inlined_call_operand.vmem [shape: bf16[32,256], index: 0, kind: input, shape index: {}]   ;;  %s1043_s1 = inlined_call_operand.vmem [shape: f32[32,1], index: 1, kind: input, shape index: {}]   ;;  %s1044_s2 = inlined_call_operand.vmem [shape: f32[32,1], index: 2, kind: input, shape index: {}]   ;;  %s1045_s3 = inlined_call_operand.vmem [shape: bf16[256,128], index: 3, kind: input, shape index: {}]   ;;  %s1046_s4 = inlined_call_operand.vmem [shape: bf16[32,128], index: 4, kind: output, shape index: {}]  }
   0x1   :  { %s916_s17 = smov 0  }
   0x2 LB: > { %s26_s18 = sadd.s32 1, %s879_s16  ;;  %p711_p0 = scmp.ge.s32.totalorder %s883_s17, 1  ;;  %s883_s17 = sphi %s916_s17, %s14_s17   ;;  %s879_s16 = sphi %s914_s16, %s1048_s16   ;;  %s875_s15 = sphi %s912_s15, %s1047_s15  }
   0x3   : > { %p28_p1 = scmp.ge.s32.totalorder %s26_s18, 2  ;;  %p183_p2 = scmp.lt.s32.totalorder %s883_s17, 3 }
   0x5   : > { %s1050_s18 = smov (%p28_p1, %s26_s18), 0  ;;  %p184_p3 = pnand %p711_p0, %p183_p2 }
   0x6   : > { %p225_p4 = scmp.eq.s32.totalorder (!%p184_p3), %s875_s15, 0 }
   0x7   : > { %187 = sbr.rel (%p184_p3) target bundleno = 584 (0x248), region = 36 }
   0xc   : > { %230 = sbr.rel (!%p225_p4) target bundleno = 17 (0x11), region = 40  ;;  %vm231_vm0 = vcmask (%p225_p4), 7168   ;;  %v885_v0 = vmov (%p225_p4), 0.0  }
   0xd   : > { %232 = vst.msk [vmem:[#allocation3] sm:$0xff] (%p225_p4), %vm231_vm0, %v885_v0  ;;  %233 = vst.msk [vmem:[#allocation3 + $0x8] sm:$0xff] (%p225_p4), %vm231_vm0, %v885_v0 }
   0xe   : > { %234 = vst.msk [vmem:[#allocation3 + $0x10] sm:$0xff] (%p225_p4), %vm231_vm0, %v885_v0  ;;  %235 = vst.msk [vmem:[#allocation3 + $0x18] sm:$0xff] (%p225_p4), %vm231_vm0, %v885_v0 }
   0xf   : > { %236 = vst.msk [vmem:[#allocation4] sm:$0xff] (%p225_p4), %vm231_vm0, %v885_v0  ;;  %237 = vst.msk [vmem:[#allocation4 + $0x8] sm:$0xff] (%p225_p4), %vm231_vm0, %v885_v0 }
  0x10   : > { %238 = vst.msk [vmem:[#allocation4 + $0x10] sm:$0xff] (%p225_p4), %vm231_vm0, %v885_v0  ;;  %239 = vst.msk [vmem:[#allocation4 + $0x18] sm:$0xff] (%p225_p4), %vm231_vm0, %v885_v0 }
  0x11 PF: > { %p713_p5 = scmp.ne.s32.totalorder %s875_s15, 0 }
  0x13   : > { %242 = sbr.rel (%p713_p5) target bundleno = 407 (0x197), region = 44 }
  0x18   : > { %v829_v1 = vld [vmem:[%s1045_s3 + $0x78] sm:$0xff]   ;;  %v831_v3 = vld [vmem:[%s1045_s3 + $0x70] sm:$0xff]   ;;  %v833_v5 = vld [vmem:[%s1045_s3 + $0x68] sm:$0xff]   ;;  %vm466_vm1 = vcmask 7168  }
  0x19   : > { %v830_v2 = vld [vmem:[%s1045_s3 + $0x38] sm:$0xff]   ;;  %759 = vmatprep.subr.bf16.mxu0 %v829_v1  ;;  %787 = vmatprep.subr.bf16.mxu1 %v829_v1  ;;  %v832_v4 = vld [vmem:[%s1045_s3 + $0x30] sm:$0xff]   ;;  %v834_v6 = vld [vmem:[%s1045_s3 + $0x28] sm:$0xff]  }
  0x1a   : > { %760 = vmatpush3.bf16.msra.mxu0 %v830_v2  ;;  %795 = vmatpush3.bf16.msra.mxu1 %v830_v2  ;;  %v835_v7 = vld [vmem:[%s1045_s3 + $0x60] sm:$0xff]   ;;  %v837_v9 = vld [vmem:[%s1045_s3 + $0x58] sm:$0xff]   ;;  %v839_v11 = vld [vmem:[%s1045_s3 + $0x50] sm:$0xff]  }
  0x1b   : > { %761 = vmatprep.subr.bf16.mxu0 %v831_v3  ;;  %788 = vmatprep.subr.bf16.mxu1 %v831_v3  ;;  %v836_v8 = vld [vmem:[%s1045_s3 + $0x20] sm:$0xff]   ;;  %v838_v10 = vld [vmem:[%s1045_s3 + $0x18] sm:$0xff]   ;;  %v840_v14 = vld [vmem:[%s1045_s3 + $0x10] sm:$0xff]  }
  0x1c   : > { %v847_v12 = vld [vmem:[%s1042_s0 + $0x4] ss:$8 sps:$4 sm:$0xff]   ;;  %v850_v13 = vld [vmem:[%s1042_s0 + $0x14] ss:$8 sps:$4 sm:$0xff]   ;;  %v845_v19 = vld [vmem:[%s1042_s0] ss:$8 sps:$4 sm:$0xff]  }
  0x1d   : > { %v841_v15 = vld [vmem:[%s1045_s3 + $0x48] sm:$0xff]   ;;  %427 = vmatprep.mubr.bf16.mxu0 %v847_v12  ;;  %435 = vmatprep.mubr.bf16.mxu1 %v850_v13  ;;  %v843_v17 = vld [vmem:[%s1045_s3 + $0x40] sm:$0xff]   ;;  %v848_v20 = vld [vmem:[%s1042_s0 + $0x10] ss:$8 sps:$4 sm:$0xff]  }
  0x1e   : > { %762 = vmatpush3.bf16.msra.mxu0 %v832_v4  ;;  %796 = vmatpush3.bf16.msra.mxu1 %v832_v4  ;;  %v842_v16 = vld [vmem:[%s1045_s3 + $0x8] sm:$0xff]   ;;  %v844_v18 = vld [vmem:[%s1045_s3] sm:$0xff]   ;;  %v452_v37 = vld [vmem:[#allocation3 + $0x10] sm:$0xff] }
  0x1f   : > { %763 = vmatprep.subr.bf16.mxu0 %v833_v5  ;;  %789 = vmatprep.subr.bf16.mxu1 %v833_v5  ;;  %v450_v38 = vld [vmem:[#allocation3] sm:$0xff]  ;;  %v453_v43 = vld [vmem:[#allocation3 + $0x18] sm:$0xff]  ;;  %v472_v49 = vld [vmem:[#allocation4 + $0x8] sm:$0xff] }
  0x20   : > { %v471_v44 = vld [vmem:[#allocation4] sm:$0xff]  ;;  %v451_v50 = vld [vmem:[#allocation3 + $0x8] sm:$0xff]  ;;  %v474_v55 = vld [vmem:[#allocation4 + $0x18] sm:$0xff] }
  0x21   : > { %v473_v56 = vld [vmem:[#allocation4 + $0x10] sm:$0xff] }
  0x22   : > { %764 = vmatpush3.bf16.msra.mxu0 %v834_v6  ;;  %797 = vmatpush3.bf16.msra.mxu1 %v834_v6 }
  0x23   : > { %765 = vmatprep.subr.bf16.mxu0 %v835_v7  ;;  %790 = vmatprep.subr.bf16.mxu1 %v835_v7 }
  0x26   : > { %766 = vmatpush3.bf16.msra.mxu0 %v836_v8  ;;  %798 = vmatpush3.bf16.msra.mxu1 %v836_v8 }
  0x27   : > { %767 = vmatprep.subr.bf16.mxu0 %v837_v9  ;;  %791 = vmatprep.subr.bf16.mxu1 %v837_v9 }
  0x2a   : > { %768 = vmatpush3.bf16.msra.mxu0 %v838_v10  ;;  %799 = vmatpush3.bf16.msra.mxu1 %v838_v10 }
  0x2b   : > { %769 = vmatprep.subr.bf16.mxu0 %v839_v11  ;;  %792 = vmatprep.subr.bf16.mxu1 %v839_v11 }
  0x2e   : > { %770 = vmatpush3.bf16.msra.mxu0 %v840_v14  ;;  %800 = vmatpush3.bf16.msra.mxu1 %v840_v14 }
  0x2f   : > { %771 = vmatprep.subr.bf16.mxu0 %v841_v15  ;;  %793 = vmatprep.subr.bf16.mxu1 %v841_v15 }
  0x32   : > { %772 = vmatpush3.bf16.msra.mxu0 %v842_v16  ;;  %801 = vmatpush3.bf16.msra.mxu1 %v842_v16 }
  0x33   : > { %773 = vmatprep.subr.bf16.mxu0 %v843_v17  ;;  %794 = vmatprep.subr.bf16.mxu1 %v843_v17 }
  0x36   : > { %774 = vmatpush3.bf16.msra.mxu0 %v844_v18  ;;  %802 = vmatpush3.bf16.msra.mxu1 %v844_v18 }
  0x39   : > { %428 = vmatmul.mubr.bf16.vlgmr.msra.gmra.mxu0 %v845_v19  ;;  %436 = vmatmul.mubr.bf16.vlgmr.msra.gmra.mxu1 %v848_v20 }
  0xf9   : > { %v775_v21 = vpop.f32.mrf.mxu0  ;;  %v781_v22 = vpop.f32.mrf.mxu1 }
  0xfb   : > { %v776_v23 = vpop.f32.mrf.mxu0  ;;  %v782_v24 = vpop.f32.mrf.mxu1 }
  0xfc   : > { %v777_v25 = vadd.f32 %v776_v23, %v775_v21  ;;  %v783_v26 = vadd.f32 %v782_v24, %v781_v22 }
  0xfd   : > { %v778_v27 = vpop.f32.mrf.mxu0  ;;  %v784_v28 = vpop.f32.mrf.mxu1 }
  0xfe   : > { %446 = vst [vmem:[#allocation2 + $0x10] sm:$0xff] %v777_v25  ;;  %448 = vst [vmem:[#allocation2 + $0x18] sm:$0xff] %v783_v26  ;;  %458 = vadd.xlane.f32.xlu1 %v783_v26  ;;  %454 = vadd.xlane.f32.xlu0 %v777_v25  ;;  %v475_v33 = vmul.f32 %v777_v25, %v777_v25  ;;  %v477_v36 = vmul.f32 %v783_v26, %v783_v26 }
  0xff   : > { %v779_v29 = vpop.f32.mrf.mxu0  ;;  %v785_v30 = vpop.f32.mrf.mxu1 }
 0x100   : > { %v780_v31 = vadd.f32 %v779_v29, %v778_v27  ;;  %v786_v32 = vadd.f32 %v785_v30, %v784_v28 }
 0x102   : > { %447 = vst [vmem:[#allocation2] sm:$0xff] %v780_v31  ;;  %449 = vst [vmem:[#allocation2 + $0x8] sm:$0xff] %v786_v32  ;;  %460 = vadd.xlane.f32.xlu1 %v786_v32  ;;  %479 = vadd.xlane.f32.xlu0 %v475_v33  ;;  %v476_v34 = vmul.f32 %v780_v31, %v780_v31  ;;  %v478_v35 = vmul.f32 %v786_v32, %v786_v32 }
 0x106   : > { %481 = vadd.xlane.f32.xlu1 %v476_v34  ;;  %456 = vadd.xlane.f32.xlu0 %v780_v31 }
 0x10a   : > { %485 = vadd.xlane.f32.xlu1 %v478_v35  ;;  %483 = vadd.xlane.f32.xlu0 %v477_v36 }
 0x187   : > { %v459_v39 = vpop.xlane.xlu1 %458  ;;  %v455_v40 = vpop.xlane.xlu0 %454 }
 0x188   : > { %v464_v41 = vadd.f32 %v459_v39, %v452_v37  ;;  %v462_v42 = vadd.f32 %v455_v40, %v450_v38 }
 0x18a   : > { %469 = vst.msk [vmem:[#allocation3 + $0x10] sm:$0xff] %vm466_vm1, %v464_v41  ;;  %467 = vst.msk [vmem:[#allocation3] sm:$0xff] %vm466_vm1, %v462_v42 }
 0x18b   : > { %v461_v45 = vpop.xlane.xlu1 %460  ;;  %v480_v46 = vpop.xlane.xlu0 %479 }
 0x18c   : > { %v465_v47 = vadd.f32 %v461_v45, %v453_v43  ;;  %v487_v48 = vadd.f32 %v480_v46, %v471_v44 }
 0x18e   : > { %470 = vst.msk [vmem:[#allocation3 + $0x18] sm:$0xff] %vm466_vm1, %v465_v47  ;;  %491 = vst.msk [vmem:[#allocation4] sm:$0xff] %vm466_vm1, %v487_v48 }
 0x18f   : > { %v482_v51 = vpop.xlane.xlu1 %481  ;;  %v457_v52 = vpop.xlane.xlu0 %456 }
 0x190   : > { %v488_v53 = vadd.f32 %v482_v51, %v472_v49  ;;  %v463_v54 = vadd.f32 %v457_v52, %v451_v50 }
 0x192   : > { %492 = vst.msk [vmem:[#allocation4 + $0x8] sm:$0xff] %vm466_vm1, %v488_v53  ;;  %468 = vst.msk [vmem:[#allocation3 + $0x8] sm:$0xff] %vm466_vm1, %v463_v54 }
 0x193   : > { %v486_v57 = vpop.xlane.xlu1 %485  ;;  %v484_v58 = vpop.xlane.xlu0 %483 }
 0x194   : > { %v490_v59 = vadd.f32 %v486_v57, %v474_v55  ;;  %v489_v60 = vadd.f32 %v484_v58, %v473_v56 }
 0x196   : > { %494 = vst.msk [vmem:[#allocation4 + $0x18] sm:$0xff] %vm466_vm1, %v490_v59  ;;  %493 = vst.msk [vmem:[#allocation4 + $0x10] sm:$0xff] %vm466_vm1, %v489_v60 }
 0x197 PF: > { %p734_p6 = scmp.ne.s32.totalorder %s875_s15, 1 }
 0x199   : > { %498 = sbr.rel (%p734_p6) target bundleno = 584 (0x248), region = 48 }
 0x19e   : > { %v501_v61 = vld [vmem:[#allocation3 + $0x10] sm:$0xff]  ;;  %v886_v63 = vmov 0   ;;  %v499_v2 = vld [vmem:[#allocation3] sm:$0xff]  ;;  %v502_v6 = vld [vmem:[#allocation3 + $0x18] sm:$0xff] }
 0x19f   : > { %v509_v62 = vld [vmem:[#allocation4 + $0x10] sm:$0xff]  ;;  %852 = vset.pattern.permute.xlu1 %v886_v63  ;;  %851 = vset.pattern.permute.xlu0 %v886_v63  ;;  %v505_v0 = vmul.f32 0.0078125, %v501_v61  ;;  %v507_v3 = vld [vmem:[#allocation4] sm:$0xff]  ;;  %v503_v4 = vmul.f32 0.0078125, %v499_v2  ;;  %v510_v7 = vld [vmem:[#allocation4 + $0x18] sm:$0xff]  ;;  %v506_v9 = vmul.f32 0.0078125, %v502_v6 }
 0x1a0   : > { %v513_v1 = vmul.f32 0.0078125, %v509_v62  ;;  %v511_v5 = vmul.f32 0.0078125, %v507_v3  ;;  %v514_v10 = vmul.f32 0.0078125, %v510_v7  ;;  %v500_v11 = vld [vmem:[#allocation3 + $0x8] sm:$0xff]  ;;  %v525_v26 = vld [vmem:[%s1043_s1 + $0x10] sm:$0xff]  ;;  %v523_v27 = vld [vmem:[%s1043_s1] sm:$0xff] }
 0x1a1   : > { %v517_v8 = vmul.f32 %v505_v0, %v505_v0  ;;  %v508_v12 = vld [vmem:[#allocation4 + $0x8] sm:$0xff]  ;;  %v515_v13 = vmul.f32 %v503_v4, %v503_v4  ;;  %v504_v14 = vmul.f32 0.0078125, %v500_v11  ;;  %v518_v17 = vmul.f32 %v506_v9, %v506_v9  ;;  %v526_v29 = vld [vmem:[%s1043_s1 + $0x18] sm:$0xff]  ;;  %v539_v40 = vld [vmem:[%s1044_s2] sm:$0xff] }
 0x1a2   : > { %v512_v15 = vmul.f32 0.0078125, %v508_v12  ;;  %v524_v32 = vld [vmem:[%s1043_s1 + $0x8] sm:$0xff]  ;;  %v542_v46 = vld [vmem:[%s1044_s2 + $0x18] sm:$0xff]  ;;  %v541_v47 = vld [vmem:[%s1044_s2 + $0x10] sm:$0xff] }
 0x1a3   : > { %v521_v16 = vsub.f32 %v513_v1, %v517_v8  ;;  %v519_v18 = vsub.f32 %v511_v5, %v515_v13  ;;  %v516_v19 = vmul.f32 %v504_v14, %v504_v14  ;;  %v522_v21 = vsub.f32 %v514_v10, %v518_v17  ;;  %v540_v39 = vld [vmem:[%s1044_s2 + $0x8] sm:$0xff]  ;;  %v554_v53 = vld [vmem:[#allocation2] sm:$0xff]  ;;  %v553_v54 = vld [vmem:[#allocation2 + $0x10] sm:$0xff] }
 0x1a4   : > { %v556_v58 = vld [vmem:[#allocation2 + $0x8] sm:$0xff]  ;;  %v555_v60 = vld [vmem:[#allocation2 + $0x18] sm:$0xff] }
 0x1a5   : > { %v529_v20 = vadd.f32 1e-05, %v521_v16  ;;  %v527_v22 = vadd.f32 1e-05, %v519_v18  ;;  %v520_v23 = vsub.f32 %v512_v15, %v516_v19  ;;  %v530_v24 = vadd.f32 1e-05, %v522_v21 }
 0x1a7   : > { %853 = vrsqrt.f32 %v529_v20  ;;  %v528_v25 = vadd.f32 1e-05, %v520_v23 }
 0x1a8   : > { %855 = vrsqrt.f32 %v527_v22 }
 0x1a9   : > { %857 = vrsqrt.f32 %v530_v24 }
 0x1aa   : > { %859 = vrsqrt.f32 %v528_v25 }
 0x1b4   : > { %v854_v28 = vpop.eup %853 }
 0x1b5   : > { %v856_v30 = vpop.eup %855  ;;  %v537_v31 = vmul.f32 %v854_v28, %v525_v26 }
 0x1b6   : > { %v858_v33 = vpop.eup %857  ;;  %v535_v34 = vmul.f32 %v856_v30, %v523_v27 }
 0x1b7   : > { %v860_v35 = vpop.eup %859  ;;  %569 = vperm.xlu1 %852, %v537_v31   ;;  %v538_v36 = vmul.f32 %v858_v33, %v526_v29  ;;  %v545_v43 = vmul.f32 %v537_v31, %v505_v0 }
 0x1b8   : > { %559 = vperm.xlu0 %851, %v535_v34   ;;  %v543_v37 = vmul.f32 %v535_v34, %v503_v4  ;;  %v536_v38 = vmul.f32 %v860_v35, %v524_v32 }
 0x1b9   : > { %v546_v42 = vmul.f32 %v538_v36, %v506_v9  ;;  %v549_v49 = vsub.f32 %v541_v47, %v545_v43 }
 0x1ba   : > { %v544_v41 = vmul.f32 %v536_v38, %v504_v14  ;;  %v547_v45 = vsub.f32 %v539_v40, %v543_v37 }
 0x1bb   : > { %574 = vperm.xlu1 %852, %v538_v36   ;;  %v550_v48 = vsub.f32 %v542_v46, %v546_v42 }
 0x1bc   : > { %564 = vperm.xlu0 %851, %v536_v38   ;;  %v548_v44 = vsub.f32 %v540_v39, %v544_v41 }
 0x1bf   : > { %588 = vperm.xlu1 %852, %v548_v44  }
 0x1c0   : > { %583 = vperm.xlu0 %851, %v547_v45  }
 0x1c3   : > { %598 = vperm.xlu1 %852, %v550_v48  }
 0x1c4   : > { %593 = vperm.xlu0 %851, %v549_v49  }
 0x232   : > { %v570_v50 = vpop.permute.xlu1 %569 }
 0x233   : > { %v560_v51 = vpop.permute.xlu0 %559  ;;  %v579_v2 = vmul.f32 %v570_v50, %v555_v60 }
 0x234   : > { %v577_v57 = vmul.f32 %v560_v51, %v553_v54 }
 0x236   : > { %v575_v52 = vpop.permute.xlu1 %574 }
 0x237   : > { %v565_v55 = vpop.permute.xlu0 %564  ;;  %v580_v0 = vmul.f32 %v575_v52, %v556_v58 }
 0x238   : > { %v578_v56 = vmul.f32 %v565_v55, %v554_v53 }
 0x23a   : > { %v589_v59 = vpop.permute.xlu1 %588 }
 0x23b   : > { %v602_v61 = vadd.f32 %v589_v59, %v578_v56  ;;  %v584_v62 = vpop.permute.xlu0 %583 }
 0x23c   : > { %v601_v63 = vadd.f32 %v584_v62, %v577_v57 }
 0x23d   : > { %vm606_vm2 = vcmp.gt.f32.partialorder %v602_v61, 0.0  ;;  %v610_v1 = vmul.f32 0.2, %v602_v61 }
 0x23e   : > { %vm605_vm3 = vcmp.gt.f32.partialorder %v601_v63, 0.0  ;;  %v609_v3 = vmul.f32 0.2, %v601_v63  ;;  %v599_v4 = vpop.permute.xlu1 %598 }
 0x23f   : > { %v614_v5 = vsel %vm606_vm2, %v602_v61, %v610_v1  ;;  %v604_v6 = vadd.f32 %v599_v4, %v580_v0  ;;  %v594_v7 = vpop.permute.xlu0 %593 }
 0x240   : > { %v613_v8 = vsel %vm605_vm3, %v601_v63, %v609_v3  ;;  %v603_v9 = vadd.f32 %v594_v7, %v579_v2 }
 0x241   : > { %v751_v10 = vpack.c.bf16 %v614_v5, %v613_v8  ;;  %vm608_vm4 = vcmp.gt.f32.partialorder %v604_v6, 0.0  ;;  %v612_v11 = vmul.f32 0.2, %v604_v6 }
 0x242   : > { %vm607_vm5 = vcmp.gt.f32.partialorder %v603_v9, 0.0  ;;  %v611_v12 = vmul.f32 0.2, %v603_v9 }
 0x243   : > { %752 = vst [vmem:[%s1046_s4] sm:$0xff] %v751_v10   ;;  %v616_v13 = vsel %vm608_vm4, %v604_v6, %v612_v11 }
 0x244   : > { %v615_v14 = vsel %vm607_vm5, %v603_v9, %v611_v12 }
 0x245   : > { %v756_v15 = vpack.c.bf16 %v616_v13, %v615_v14 }
 0x247   : > { %758 = vst [vmem:[%s1046_s4 + $0x8] sm:$0xff] %v756_v15  }
 0x248 PF: > { %s14_s17 = sadd.s32 1, %s883_s17   ;;  %s1047_s15 = smov %s879_s16 }
 0x249   : > { %p11_p7 = scmp.ge.s32.totalorder %s14_s17, 4   ;;  %s1048_s16 = smov %s1050_s18 }
 0x24b   :  { %13 = sbr.rel (!%p11_p7) target bundleno = 2 (0x2), region = 80 }

</bundles_post_ra>
